<compile_context>
chip_gen: v7x
topology: tpu7x:2x2x1
jax: 0.10.0
libtpu: 0.0.40
codegen_flags: <defaults>
</compile_context>

<pallas_src>
import functools

import jax
import jax.numpy as jnp
from jax.experimental import pallas as pl
from jax.experimental.pallas import tpu as pltpu

VMEM_SPEC = pl.BlockSpec(memory_space=pltpu.MemorySpace.VMEM)
OUT_PAD = 128  # padded lane width of the final logits (real width = 3)


# ---------------------------------------------------------------------------
# Bidirectional single-layer recurrence, traced inside the fused kernel.
#
# xw_ref : (L*B2, 8H) VMEM scratch holding x@W_ih + bias.
#          cols [0:4H]  = forward-direction gate pre-activations (i,f,g,o)
#          cols [4H:8H] = backward-direction gate pre-activations (i,f,g,o)
#          row t*B2 + j = time t, stacked batch row j (a rows then b rows).
# w_hh   : (H, 8H) value, [W_hh_fwd | W_hh_bwd] along the gate axis.
# seq_ref: optional (L*B2, 2H) VMEM scratch for the layer output sequence
#          (cols 0:H fwd hidden, H:2H bwd hidden); None for the last layer.
# Returns final cell states (c_fwd, c_bwd), each (B2, H).
# ---------------------------------------------------------------------------
def _bidir_recurrence(xw_ref, w_hh, seq_ref, *, B2, L, H):
    G = 4 * H
    R = 2 * B2  # rows 0:B2 = forward direction, rows B2:2*B2 = backward direction

    h_all = jnp.zeros((R, H), jnp.float32)
    c_all = jnp.zeros((R, H), jnp.float32)

    is_fwd = jax.lax.broadcasted_iota(jnp.int32, (R, G), 0) < B2
    lane = jax.lax.broadcasted_iota(jnp.int32, (R, G), 1)
    is_g_lane = (lane >= 2 * H) & (lane < 3 * H)  # the 'g' gate uses tanh

    for t in range(L):  # fully unrolled: L is a compile-time constant
        rt = L - 1 - t  # backward direction walks the sequence in reverse

        xw_f = xw_ref[t * B2:(t + 1) * B2, 0:G]            # (B2, 4H)
        xw_b = xw_ref[rt * B2:(rt + 1) * B2, G:2 * G]      # (B2, 4H)
        xw_all = jnp.concatenate([xw_f, xw_b], axis=0)     # (R, 4H)

        # One shared matmul for both directions; per-row select of the half.
        hh = jnp.dot(h_all, w_hh, preferred_element_type=jnp.float32)  # (R, 8H)
        gates = xw_all + jnp.where(is_fwd, hh[:, 0:G], hh[:, G:2 * G])

        # Whole-vreg activations, gate selection via lane mask (PyTorch order i,f,g,o).
        act = jnp.where(is_g_lane, jnp.tanh(gates), jax.nn.sigmoid(gates))
        i_g = act[:, 0:H]
        f_g = act[:, H:2 * H]
        g_g = act[:, 2 * H:3 * H]
        o_g = act[:, 3 * H:4 * H]

        c_all = f_g * c_all + i_g * g_g
        h_all = o_g * jnp.tanh(c_all)

        if seq_ref is not None:
            # forward hidden goes to time t, backward hidden to original time rt
            seq_ref[t * B2:(t + 1) * B2, 0:H] = h_all[0:B2]
            seq_ref[rt * B2:(rt + 1) * B2, H:2 * H] = h_all[B2:R]

    return c_all[0:B2], c_all[B2:R]


# ---------------------------------------------------------------------------
# Fused forward kernel: input_fc -> 2-layer bidir LSTM (a&b stacked) -> tail MLP.
# ---------------------------------------------------------------------------
def _fused_forward_kernel(x_ref, ifc_w_ref, ifc_b_ref,
                          w_ih0_ref, w_hh0_ref, b0_ref,
                          w_ih1_ref, w_hh1_ref, b1_ref,
                          fc_w_ref, fc_b_ref, out_w_ref, out_b_ref,
                          y_ref,
                          xw_ref, seq_ref, *, B, L, H):
    B2 = 2 * B  # a and b stacked along the batch axis

    # input_fc for every timestep of both sequences: one matmul.
    h_in = (jnp.dot(x_ref[...], ifc_w_ref[...], preferred_element_type=jnp.float32)
            + ifc_b_ref[...])                                        # (L*B2, H)

    # ----- layer 0: hoisted input projection + recurrence -----
    xw_ref[...] = (jnp.dot(h_in, w_ih0_ref[...], preferred_element_type=jnp.float32)
                   + b0_ref[...])                                    # (L*B2, 8H)
    c_f0, c_b0 = _bidir_recurrence(xw_ref, w_hh0_ref[...], seq_ref, B2=B2, L=L, H=H)

    # ----- layer 1: hoisted input projection + recurrence (c states only) -----
    xw_ref[...] = (jnp.dot(seq_ref[...], w_ih1_ref[...], preferred_element_type=jnp.float32)
                   + b1_ref[...])                                    # (L*B2, 8H)
    c_f1, c_b1 = _bidir_recurrence(xw_ref, w_hh1_ref[...], None, B2=B2, L=L, H=H)

    # ----- tail: c_n gather (order l0_fwd,l0_bwd,l1_fwd,l1_bwd), fc+ReLU, output_fc -----
    v_a = jnp.concatenate([c_f0[:B], c_b0[:B], c_f1[:B], c_b1[:B]], axis=1)  # (B, 4H)
    v_b = jnp.concatenate([c_f0[B:], c_b0[B:], c_f1[B:], c_b1[B:]], axis=1)  # (B, 4H)
    v = jnp.concatenate([v_a, v_b], axis=1)                                  # (B, 8H)

    hid = jnp.maximum(
        jnp.dot(v, fc_w_ref[...], preferred_element_type=jnp.float32) + fc_b_ref[...],
        0.0)                                                                 # (B, H)
    y_ref[...] = (jnp.dot(hid, out_w_ref[...], preferred_element_type=jnp.float32)
                  + out_b_ref[...])                                          # (B, 128)


# ---------------------------------------------------------------------------
# Full Model forward (embedding gather is XLA glue; everything else is one kernel).
# ---------------------------------------------------------------------------
def model_forward(params, a_idx, b_idx):
    emb = params['embedding']                   # (V, E)
    H = params['fc_b'].shape[1]
    E = emb.shape[1]
    B, La = a_idx.shape
    Bb, Lb = b_idx.shape
    assert B == Bb
    # TODO(synk): a and b are stacked along the batch axis, so they must share
    # the same sequence length; unequal lengths would need two kernel invocations.
    assert La == Lb, "fused kernel requires equal sequence lengths for a and b"
    L = La
    B2 = 2 * B

    a_e = jnp.take(emb, a_idx, axis=0)           # (B, L, E)
    b_e = jnp.take(emb, b_idx, axis=0)           # (B, L, E)
    x = jnp.concatenate([a_e, b_e], axis=0)      # (2B, L, E)  rows: a then b
    x = jnp.transpose(x, (1, 0, 2)).reshape(L * B2, E).astype(jnp.float32)

    kern = functools.partial(_fused_forward_kernel, B=B, L=L, H=H)
    y_pad = pl.pallas_call(
        kern,
        out_shape=jax.ShapeDtypeStruct((B, OUT_PAD), jnp.float32),
        in_specs=[VMEM_SPEC] * 13,
        out_specs=VMEM_SPEC,
        scratch_shapes=[
            pltpu.VMEM((L * B2, 8 * H), jnp.float32),   # hoisted gate pre-activations
            pltpu.VMEM((L * B2, 2 * H), jnp.float32),   # layer-0 output sequence
        ],
    )(x,
      params['input_fc_w'], params['input_fc_b'],
      params['w_ih0'], params['w_hh0'], params['b0'],
      params['w_ih1'], params['w_hh1'], params['b1'],
      params['fc_w'], params['fc_b'],
      params['out_w_pad'], params['out_b_pad'])

    return y_pad[:, :3]


# ---------------------------------------------------------------------------
# Deterministic parameter construction.
# LSTM weights are stored transposed ((D_in, 4H) per direction) and concatenated
# as [fwd | bwd] along the gate axis; biases are b_ih + b_hh combined.
# ---------------------------------------------------------------------------
def init_params(key, vocab, emb_dim, hidden_dim):
    keys = iter(jax.random.split(key, 32))

    def u(shape, scale=0.1):
        return jax.random.uniform(next(keys), shape, jnp.float32, -scale, scale)

    H = hidden_dim
    params = {
        'embedding': u((vocab, emb_dim), 1.0),
        'input_fc_w': u((emb_dim, H)),
        'input_fc_b': u((1, H)),
        'fc_w': u((8 * H, H)),
        'fc_b': u((1, H)),
    }
    out_w = u((H, 3))
    out_b = u((1, 3))
    params['out_w_pad'] = jnp.pad(out_w, ((0, 0), (0, OUT_PAD - 3)))
    params['out_b_pad'] = jnp.pad(out_b, ((0, 0), (0, OUT_PAD - 3)))

    for layer, d_in in ((0, H), (1, 2 * H)):
        w_ih = jnp.concatenate([u((d_in, 4 * H)), u((d_in, 4 * H))], axis=1)  # (d_in, 8H)
        w_hh = jnp.concatenate([u((H, 4 * H)), u((H, 4 * H))], axis=1)        # (H, 8H)
        bias = jnp.concatenate([u((1, 4 * H)), u((1, 4 * H))], axis=1)        # (1, 8H)
        params[f'w_ih{layer}'] = w_ih
        params[f'w_hh{layer}'] = w_hh
        params[f'b{layer}'] = bias
    return params


if __name__ == "__main__":
    key = jax.random.PRNGKey(0)
    k_param, k_a, k_b = jax.random.split(key, 3)

    VOCAB, EMB_DIM, HIDDEN = 50, 32, 32
    B, L = 2, 8

    params = init_params(k_param, VOCAB, EMB_DIM, HIDDEN)
    a_idx = jax.random.randint(k_a, (B, L), 0, VOCAB, dtype=jnp.int32)
    b_idx = jax.random.randint(k_b, (B, L), 0, VOCAB, dtype=jnp.int32)

    fwd = jax.jit(model_forward)
    y = jax.block_until_ready(fwd(params, a_idx, b_idx))
    assert y.shape == (B, 3), y.shape
    print("KERNEL_OK")
</pallas_src>

<mosaic_0001>
module attributes {stable_mosaic.version = 11 : i64} {
  func.func @_fused_forward_kernel(%arg0: memref<32x32xf32, #tpu.memory_space<vmem>>, %arg1: memref<32x32xf32, #tpu.memory_space<vmem>>, %arg2: memref<1x32xf32, #tpu.memory_space<vmem>>, %arg3: memref<32x256xf32, #tpu.memory_space<vmem>>, %arg4: memref<32x256xf32, #tpu.memory_space<vmem>>, %arg5: memref<1x256xf32, #tpu.memory_space<vmem>>, %arg6: memref<64x256xf32, #tpu.memory_space<vmem>>, %arg7: memref<32x256xf32, #tpu.memory_space<vmem>>, %arg8: memref<1x256xf32, #tpu.memory_space<vmem>>, %arg9: memref<256x32xf32, #tpu.memory_space<vmem>>, %arg10: memref<1x32xf32, #tpu.memory_space<vmem>>, %arg11: memref<32x128xf32, #tpu.memory_space<vmem>>, %arg12: memref<1x128xf32, #tpu.memory_space<vmem>>, %arg13: memref<2x128xf32, #tpu.memory_space<vmem>>, %arg14: memref<32x256xf32, #tpu.memory_space<vmem>>, %arg15: memref<32x64xf32, #tpu.memory_space<vmem>>) attributes {dimension_semantics = [], scalar_prefetch = 0 : i64, scratch_operands = 2 : i64, tpu.core_type = #tpu.core_type<tc>} {
    %c0 = arith.constant 0 : index
    %c0_0 = arith.constant 0 : index
    %0 = vector.load %arg0[%c0, %c0_0] : memref<32x32xf32, #tpu.memory_space<vmem>>, vector<32x32xf32>
    %c0_1 = arith.constant 0 : index
    %c0_2 = arith.constant 0 : index
    %1 = vector.load %arg1[%c0_1, %c0_2] : memref<32x32xf32, #tpu.memory_space<vmem>>, vector<32x32xf32>
    %cst = arith.constant dense<0.000000e+00> : vector<32x32xf32>
    %2 = tpu.matmul %0, %1, %cst {dimension_numbers = #tpu.dot_dimension_numbers<[1], [0], [0], [1], [0, 0, 1, 1], [], []>} : vector<32x32xf32>, vector<32x32xf32>, vector<32x32xf32> -> vector<32x32xf32>
    %c0_3 = arith.constant 0 : index
    %c0_4 = arith.constant 0 : index
    %3 = vector.load %arg2[%c0_3, %c0_4] : memref<1x32xf32, #tpu.memory_space<vmem>>, vector<1x32xf32>
    %4 = vector.broadcast %3 : vector<1x32xf32> to vector<32x32xf32>
    %5 = arith.addf %2, %4 : vector<32x32xf32>
    %c0_5 = arith.constant 0 : index
    %c0_6 = arith.constant 0 : index
    %6 = vector.load %arg3[%c0_5, %c0_6] : memref<32x256xf32, #tpu.memory_space<vmem>>, vector<32x256xf32>
    %cst_7 = arith.constant dense<0.000000e+00> : vector<32x256xf32>
    %7 = tpu.matmul %5, %6, %cst_7 {dimension_numbers = #tpu.dot_dimension_numbers<[1], [0], [0], [1], [0, 0, 1, 1], [], []>} : vector<32x32xf32>, vector<32x256xf32>, vector<32x256xf32> -> vector<32x256xf32>
    %c0_8 = arith.constant 0 : index
    %c0_9 = arith.constant 0 : index
    %8 = vector.load %arg5[%c0_8, %c0_9] : memref<1x256xf32, #tpu.memory_space<vmem>>, vector<1x256xf32>
    %9 = vector.broadcast %8 : vector<1x256xf32> to vector<32x256xf32>
    %10 = arith.addf %7, %9 : vector<32x256xf32>
    %c0_10 = arith.constant 0 : index
    %c0_11 = arith.constant 0 : index
    %11 = vector.load %arg14[%c0_10, %c0_11] : memref<32x256xf32, #tpu.memory_space<vmem>>, vector<32x256xf32>
    tpu.vector_store %arg14[%c0_10, %c0_11], %10 {strides = array<i32>} : memref<32x256xf32, #tpu.memory_space<vmem>>, vector<32x256xf32>,
    %c0_12 = arith.constant 0 : index
    %c0_13 = arith.constant 0 : index
    %12 = vector.load %arg4[%c0_12, %c0_13] : memref<32x256xf32, #tpu.memory_space<vmem>>, vector<32x256xf32>
    %cst_14 = arith.constant 0.000000e+00 : f32
    %13 = vector.broadcast %cst_14 : f32 to vector<8x32xf32>
    %cst_15 = arith.constant 0.000000e+00 : f32
    %14 = vector.broadcast %cst_15 : f32 to vector<8x32xf32>
    %15 = tpu.iota {dimensions = array<i32: 0>} : vector<8x128xi32>
    %c4_i32 = arith.constant 4 : i32
    %16 = vector.broadcast %c4_i32 : i32 to vector<8x128xi32>
    %17 = arith.cmpi slt, %15, %16 : vector<8x128xi32>
    %18 = tpu.iota {dimensions = array<i32: 1>} : vector<8x128xi32>
    %c64_i32 = arith.constant 64 : i32
    %19 = vector.broadcast %c64_i32 : i32 to vector<8x128xi32>
    %20 = arith.cmpi sge, %18, %19 : vector<8x128xi32>
    %c96_i32 = arith.constant 96 : i32
    %21 = vector.broadcast %c96_i32 : i32 to vector<8x128xi32>
    %22 = arith.cmpi slt, %18, %21 : vector<8x128xi32>
    %23 = arith.andi %20, %22 : vector<8x128xi1>
    %c0_16 = arith.constant 0 : index
    %c0_17 = arith.constant 0 : index
    %24 = vector.load %arg14[%c0_16, %c0_17] : memref<32x256xf32, #tpu.memory_space<vmem>>, vector<4x128xf32>
    %c28 = arith.constant 28 : index
    %c128 = arith.constant 128 : index
    %25 = vector.load %arg14[%c28, %c128] : memref<32x256xf32, #tpu.memory_space<vmem>>, vector<4x128xf32>
    %26 = tpu.concatenate %24, %25 in 0 : vector<4x128xf32>, vector<4x128xf32> -> vector<8x128xf32>
    %cst_18 = arith.constant dense<0.000000e+00> : vector<8x256xf32>
    %27 = tpu.matmul %13, %12, %cst_18 {dimension_numbers = #tpu.dot_dimension_numbers<[1], [0], [0], [1], [0, 0, 1, 1], [], []>} : vector<8x32xf32>, vector<32x256xf32>, vector<8x256xf32> -> vector<8x256xf32>
    %28 = vector.extract_strided_slice %27 {offsets = [0, 0], sizes = [8, 128], strides = [1, 1]} : vector<8x256xf32> to vector<8x128xf32>
    %29 = vector.extract_strided_slice %27 {offsets = [0, 128], sizes = [8, 128], strides = [1, 1]} : vector<8x256xf32> to vector<8x128xf32>
    %30 = arith.select %17, %28, %29 : vector<8x128xi1>, vector<8x128xf32>
    %31 = arith.addf %26, %30 : vector<8x128xf32>
    %32 = math.tanh %31 : vector<8x128xf32>
    %33 = arith.negf %31 : vector<8x128xf32>
    %34 = math.exp %33 : vector<8x128xf32>
    %cst_19 = arith.constant 1.000000e+00 : f32
    %35 = vector.broadcast %cst_19 : f32 to vector<8x128xf32>
    %36 = arith.addf %35, %34 : vector<8x128xf32>
    %37 = arith.divf %35, %36 : vector<8x128xf32>
    %38 = arith.select %23, %32, %37 : vector<8x128xi1>, vector<8x128xf32>
    %39 = vector.extract_strided_slice %38 {offsets = [0, 0], sizes = [8, 32], strides = [1, 1]} : vector<8x128xf32> to vector<8x32xf32>
    %40 = vector.extract_strided_slice %38 {offsets = [0, 32], sizes = [8, 32], strides = [1, 1]} : vector<8x128xf32> to vector<8x32xf32>
    %41 = vector.extract_strided_slice %38 {offsets = [0, 64], sizes = [8, 32], strides = [1, 1]} : vector<8x128xf32> to vector<8x32xf32>
    %42 = vector.extract_strided_slice %38 {offsets = [0, 96], sizes = [8, 32], strides = [1, 1]} : vector<8x128xf32> to vector<8x32xf32>
    %43 = arith.mulf %40, %14 : vector<8x32xf32>
    %44 = arith.mulf %39, %41 : vector<8x32xf32>
    %45 = arith.addf %43, %44 : vector<8x32xf32>
    %46 = math.tanh %45 : vector<8x32xf32>
    %47 = arith.mulf %42, %46 : vector<8x32xf32>
    %48 = vector.extract_strided_slice %47 {offsets = [0, 0], sizes = [4, 32], strides = [1, 1]} : vector<8x32xf32> to vector<4x32xf32>
    %c0_20 = arith.constant 0 : index
    %c0_21 = arith.constant 0 : index
    %49 = vector.load %arg15[%c0_20, %c0_21] : memref<32x64xf32, #tpu.memory_space<vmem>>, vector<4x32xf32>
    tpu.vector_store %arg15[%c0_20, %c0_21], %48 {strides = array<i32>} : memref<32x64xf32, #tpu.memory_space<vmem>>, vector<4x32xf32>,
    %50 = vector.extract_strided_slice %47 {offsets = [4, 0], sizes = [4, 32], strides = [1, 1]} : vector<8x32xf32> to vector<4x32xf32>
    %c28_22 = arith.constant 28 : index
    %c32 = arith.constant 32 : index
    %51 = vector.load %arg15[%c28_22, %c32] : memref<32x64xf32, #tpu.memory_space<vmem>>, vector<4x32xf32>
    tpu.vector_store %arg15[%c28_22, %c32], %50 {strides = array<i32>} : memref<32x64xf32, #tpu.memory_space<vmem>>, vector<4x32xf32>,
    %c4 = arith.constant 4 : index
    %c0_23 = arith.constant 0 : index
    %52 = vector.load %arg14[%c4, %c0_23] : memref<32x256xf32, #tpu.memory_space<vmem>>, vector<4x128xf32>
    %c24 = arith.constant 24 : index
    %c128_24 = arith.constant 128 : index
    %53 = vector.load %arg14[%c24, %c128_24] : memref<32x256xf32, #tpu.memory_space<vmem>>, vector<4x128xf32>
    %54 = tpu.concatenate %52, %53 in 0 : vector<4x128xf32>, vector<4x128xf32> -> vector<8x128xf32>
    %cst_25 = arith.constant dense<0.000000e+00> : vector<8x256xf32>
    %55 = tpu.matmul %47, %12, %cst_25 {dimension_numbers = #tpu.dot_dimension_numbers<[1], [0], [0], [1], [0, 0, 1, 1], [], []>} : vector<8x32xf32>, vector<32x256xf32>, vector<8x256xf32> -> vector<8x256xf32>
    %56 = vector.extract_strided_slice %55 {offsets = [0, 0], sizes = [8, 128], strides = [1, 1]} : vector<8x256xf32> to vector<8x128xf32>
    %57 = vector.extract_strided_slice %55 {offsets = [0, 128], sizes = [8, 128], strides = [1, 1]} : vector<8x256xf32> to vector<8x128xf32>
    %58 = arith.select %17, %56, %57 : vector<8x128xi1>, vector<8x128xf32>
    %59 = arith.addf %54, %58 : vector<8x128xf32>
    %60 = math.tanh %59 : vector<8x128xf32>
    %61 = arith.negf %59 : vector<8x128xf32>
    %62 = math.exp %61 : vector<8x128xf32>
    %cst_26 = arith.constant 1.000000e+00 : f32
    %63 = vector.broadcast %cst_26 : f32 to vector<8x128xf32>
    %64 = arith.addf %63, %62 : vector<8x128xf32>
    %65 = arith.divf %63, %64 : vector<8x128xf32>
    %66 = arith.select %23, %60, %65 : vector<8x128xi1>, vector<8x128xf32>
    %67 = vector.extract_strided_slice %66 {offsets = [0, 0], sizes = [8, 32], strides = [1, 1]} : vector<8x128xf32> to vector<8x32xf32>
    %68 = vector.extract_strided_slice %66 {offsets = [0, 32], sizes = [8, 32], strides = [1, 1]} : vector<8x128xf32> to vector<8x32xf32>
    %69 = vector.extract_strided_slice %66 {offsets = [0, 64], sizes = [8, 32], strides = [1, 1]} : vector<8x128xf32> to vector<8x32xf32>
    %70 = vector.extract_strided_slice %66 {offsets = [0, 96], sizes = [8, 32], strides = [1, 1]} : vector<8x128xf32> to vector<8x32xf32>
    %71 = arith.mulf %68, %45 : vector<8x32xf32>
    %72 = arith.mulf %67, %69 : vector<8x32xf32>
    %73 = arith.addf %71, %72 : vector<8x32xf32>
    %74 = math.tanh %73 : vector<8x32xf32>
    %75 = arith.mulf %70, %74 : vector<8x32xf32>
    %76 = vector.extract_strided_slice %75 {offsets = [0, 0], sizes = [4, 32], strides = [1, 1]} : vector<8x32xf32> to vector<4x32xf32>
    %c4_27 = arith.constant 4 : index
    %c0_28 = arith.constant 0 : index
    %77 = vector.load %arg15[%c4_27, %c0_28] : memref<32x64xf32, #tpu.memory_space<vmem>>, vector<4x32xf32>
    tpu.vector_store %arg15[%c4_27, %c0_28], %76 {strides = array<i32>} : memref<32x64xf32, #tpu.memory_space<vmem>>, vector<4x32xf32>,
    %78 = vector.extract_strided_slice %75 {offsets = [4, 0], sizes = [4, 32], strides = [1, 1]} : vector<8x32xf32> to vector<4x32xf32>
    %c24_29 = arith.constant 24 : index
    %c32_30 = arith.constant 32 : index
    %79 = vector.load %arg15[%c24_29, %c32_30] : memref<32x64xf32, #tpu.memory_space<vmem>>, vector<4x32xf32>
    tpu.vector_store %arg15[%c24_29, %c32_30], %78 {strides = array<i32>} : memref<32x64xf32, #tpu.memory_space<vmem>>, vector<4x32xf32>,
    %c8 = arith.constant 8 : index
    %c0_31 = arith.constant 0 : index
    %80 = vector.load %arg14[%c8, %c0_31] : memref<32x256xf32, #tpu.memory_space<vmem>>, vector<4x128xf32>
    %c20 = arith.constant 20 : index
    %c128_32 = arith.constant 128 : index
    %81 = vector.load %arg14[%c20, %c128_32] : memref<32x256xf32, #tpu.memory_space<vmem>>, vector<4x128xf32>
    %82 = tpu.concatenate %80, %81 in 0 : vector<4x128xf32>, vector<4x128xf32> -> vector<8x128xf32>
    %cst_33 = arith.constant dense<0.000000e+00> : vector<8x256xf32>
    %83 = tpu.matmul %75, %12, %cst_33 {dimension_numbers = #tpu.dot_dimension_numbers<[1], [0], [0], [1], [0, 0, 1, 1], [], []>} : vector<8x32xf32>, vector<32x256xf32>, vector<8x256xf32> -> vector<8x256xf32>
    %84 = vector.extract_strided_slice %83 {offsets = [0, 0], sizes = [8, 128], strides = [1, 1]} : vector<8x256xf32> to vector<8x128xf32>
    %85 = vector.extract_strided_slice %83 {offsets = [0, 128], sizes = [8, 128], strides = [1, 1]} : vector<8x256xf32> to vector<8x128xf32>
    %86 = arith.select %17, %84, %85 : vector<8x128xi1>, vector<8x128xf32>
    %87 = arith.addf %82, %86 : vector<8x128xf32>
    %88 = math.tanh %87 : vector<8x128xf32>
    %89 = arith.negf %87 : vector<8x128xf32>
    %90 = math.exp %89 : vector<8x128xf32>
    %cst_34 = arith.constant 1.000000e+00 : f32
    %91 = vector.broadcast %cst_34 : f32 to vector<8x128xf32>
    %92 = arith.addf %91, %90 : vector<8x128xf32>
    %93 = arith.divf %91, %92 : vector<8x128xf32>
    %94 = arith.select %23, %88, %93 : vector<8x128xi1>, vector<8x128xf32>
    %95 = vector.extract_strided_slice %94 {offsets = [0, 0], sizes = [8, 32], strides = [1, 1]} : vector<8x128xf32> to vector<8x32xf32>
    %96 = vector.extract_strided_slice %94 {offsets = [0, 32], sizes = [8, 32], strides = [1, 1]} : vector<8x128xf32> to vector<8x32xf32>
    %97 = vector.extract_strided_slice %94 {offsets = [0, 64], sizes = [8, 32], strides = [1, 1]} : vector<8x128xf32> to vector<8x32xf32>
    %98 = vector.extract_strided_slice %94 {offsets = [0, 96], sizes = [8, 32], strides = [1, 1]} : vector<8x128xf32> to vector<8x32xf32>
    %99 = arith.mulf %96, %73 : vector<8x32xf32>
    %100 = arith.mulf %95, %97 : vector<8x32xf32>
    %101 = arith.addf %99, %100 : vector<8x32xf32>
    %102 = math.tanh %101 : vector<8x32xf32>
    %103 = arith.mulf %98, %102 : vector<8x32xf32>
    %104 = vector.extract_strided_slice %103 {offsets = [0, 0], sizes = [4, 32], strides = [1, 1]} : vector<8x32xf32> to vector<4x32xf32>
    %c8_35 = arith.constant 8 : index
    %c0_36 = arith.constant 0 : index
    %105 = vector.load %arg15[%c8_35, %c0_36] : memref<32x64xf32, #tpu.memory_space<vmem>>, vector<4x32xf32>
    tpu.vector_store %arg15[%c8_35, %c0_36], %104 {strides = array<i32>} : memref<32x64xf32, #tpu.memory_space<vmem>>, vector<4x32xf32>,
    %106 = vector.extract_strided_slice %103 {offsets = [4, 0], sizes = [4, 32], strides = [1, 1]} : vector<8x32xf32> to vector<4x32xf32>
    %c20_37 = arith.constant 20 : index
    %c32_38 = arith.constant 32 : index
    %107 = vector.load %arg15[%c20_37, %c32_38] : memref<32x64xf32, #tpu.memory_space<vmem>>, vector<4x32xf32>
    tpu.vector_store %arg15[%c20_37, %c32_38], %106 {strides = array<i32>} : memref<32x64xf32, #tpu.memory_space<vmem>>, vector<4x32xf32>,
    %c12 = arith.constant 12 : index
    %c0_39 = arith.constant 0 : index
    %108 = vector.load %arg14[%c12, %c0_39] : memref<32x256xf32, #tpu.memory_space<vmem>>, vector<4x128xf32>
    %c16 = arith.constant 16 : index
    %c128_40 = arith.constant 128 : index
    %109 = vector.load %arg14[%c16, %c128_40] : memref<32x256xf32, #tpu.memory_space<vmem>>, vector<4x128xf32>
    %110 = tpu.concatenate %108, %109 in 0 : vector<4x128xf32>, vector<4x128xf32> -> vector<8x128xf32>
    %cst_41 = arith.constant dense<0.000000e+00> : vector<8x256xf32>
    %111 = tpu.matmul %103, %12, %cst_41 {dimension_numbers = #tpu.dot_dimension_numbers<[1], [0], [0], [1], [0, 0, 1, 1], [], []>} : vector<8x32xf32>, vector<32x256xf32>, vector<8x256xf32> -> vector<8x256xf32>
    %112 = vector.extract_strided_slice %111 {offsets = [0, 0], sizes = [8, 128], strides = [1, 1]} : vector<8x256xf32> to vector<8x128xf32>
    %113 = vector.extract_strided_slice %111 {offsets = [0, 128], sizes = [8, 128], strides = [1, 1]} : vector<8x256xf32> to vector<8x128xf32>
    %114 = arith.select %17, %112, %113 : vector<8x128xi1>, vector<8x128xf32>
    %115 = arith.addf %110, %114 : vector<8x128xf32>
    %116 = math.tanh %115 : vector<8x128xf32>
    %117 = arith.negf %115 : vector<8x128xf32>
    %118 = math.exp %117 : vector<8x128xf32>
    %cst_42 = arith.constant 1.000000e+00 : f32
    %119 = vector.broadcast %cst_42 : f32 to vector<8x128xf32>
    %120 = arith.addf %119, %118 : vector<8x128xf32>
    %121 = arith.divf %119, %120 : vector<8x128xf32>
    %122 = arith.select %23, %116, %121 : vector<8x128xi1>, vector<8x128xf32>
    %123 = vector.extract_strided_slice %122 {offsets = [0, 0], sizes = [8, 32], strides = [1, 1]} : vector<8x128xf32> to vector<8x32xf32>
    %124 = vector.extract_strided_slice %122 {offsets = [0, 32], sizes = [8, 32], strides = [1, 1]} : vector<8x128xf32> to vector<8x32xf32>
    %125 = vector.extract_strided_slice %122 {offsets = [0, 64], sizes = [8, 32], strides = [1, 1]} : vector<8x128xf32> to vector<8x32xf32>
    %126 = vector.extract_strided_slice %122 {offsets = [0, 96], sizes = [8, 32], strides = [1, 1]} : vector<8x128xf32> to vector<8x32xf32>
    %127 = arith.mulf %124, %101 : vector<8x32xf32>
    %128 = arith.mulf %123, %125 : vector<8x32xf32>
    %129 = arith.addf %127, %128 : vector<8x32xf32>
    %130 = math.tanh %129 : vector<8x32xf32>
    %131 = arith.mulf %126, %130 : vector<8x32xf32>
    %132 = vector.extract_strided_slice %131 {offsets = [0, 0], sizes = [4, 32], strides = [1, 1]} : vector<8x32xf32> to vector<4x32xf32>
    %c12_43 = arith.constant 12 : index
    %c0_44 = arith.constant 0 : index
    %133 = vector.load %arg15[%c12_43, %c0_44] : memref<32x64xf32, #tpu.memory_space<vmem>>, vector<4x32xf32>
    tpu.vector_store %arg15[%c12_43, %c0_44], %132 {strides = array<i32>} : memref<32x64xf32, #tpu.memory_space<vmem>>, vector<4x32xf32>,
    %134 = vector.extract_strided_slice %131 {offsets = [4, 0], sizes = [4, 32], strides = [1, 1]} : vector<8x32xf32> to vector<4x32xf32>
    %c16_45 = arith.constant 16 : index
    %c32_46 = arith.constant 32 : index
    %135 = vector.load %arg15[%c16_45, %c32_46] : memref<32x64xf32, #tpu.memory_space<vmem>>, vector<4x32xf32>
    tpu.vector_store %arg15[%c16_45, %c32_46], %134 {strides = array<i32>} : memref<32x64xf32, #tpu.memory_space<vmem>>, vector<4x32xf32>,
    %c16_47 = arith.constant 16 : index
    %c0_48 = arith.constant 0 : index
    %136 = vector.load %arg14[%c16_47, %c0_48] : memref<32x256xf32, #tpu.memory_space<vmem>>, vector<4x128xf32>
    %c12_49 = arith.constant 12 : index
    %c128_50 = arith.constant 128 : index
    %137 = vector.load %arg14[%c12_49, %c128_50] : memref<32x256xf32, #tpu.memory_space<vmem>>, vector<4x128xf32>
    %138 = tpu.concatenate %136, %137 in 0 : vector<4x128xf32>, vector<4x128xf32> -> vector<8x128xf32>
    %cst_51 = arith.constant dense<0.000000e+00> : vector<8x256xf32>
    %139 = tpu.matmul %131, %12, %cst_51 {dimension_numbers = #tpu.dot_dimension_numbers<[1], [0], [0], [1], [0, 0, 1, 1], [], []>} : vector<8x32xf32>, vector<32x256xf32>, vector<8x256xf32> -> vector<8x256xf32>
    %140 = vector.extract_strided_slice %139 {offsets = [0, 0], sizes = [8, 128], strides = [1, 1]} : vector<8x256xf32> to vector<8x128xf32>
    %141 = vector.extract_strided_slice %139 {offsets = [0, 128], sizes = [8, 128], strides = [1, 1]} : vector<8x256xf32> to vector<8x128xf32>
    %142 = arith.select %17, %140, %141 : vector<8x128xi1>, vector<8x128xf32>
    %143 = arith.addf %138, %142 : vector<8x128xf32>
    %144 = math.tanh %143 : vector<8x128xf32>
    %145 = arith.negf %143 : vector<8x128xf32>
    %146 = math.exp %145 : vector<8x128xf32>
    %cst_52 = arith.constant 1.000000e+00 : f32
    %147 = vector.broadcast %cst_52 : f32 to vector<8x128xf32>
    %148 = arith.addf %147, %146 : vector<8x128xf32>
    %149 = arith.divf %147, %148 : vector<8x128xf32>
    %150 = arith.select %23, %144, %149 : vector<8x128xi1>, vector<8x128xf32>
    %151 = vector.extract_strided_slice %150 {offsets = [0, 0], sizes = [8, 32], strides = [1, 1]} : vector<8x128xf32> to vector<8x32xf32>
    %152 = vector.extract_strided_slice %150 {offsets = [0, 32], sizes = [8, 32], strides = [1, 1]} : vector<8x128xf32> to vector<8x32xf32>
    %153 = vector.extract_strided_slice %150 {offsets = [0, 64], sizes = [8, 32], strides = [1, 1]} : vector<8x128xf32> to vector<8x32xf32>
    %154 = vector.extract_strided_slice %150 {offsets = [0, 96], sizes = [8, 32], strides = [1, 1]} : vector<8x128xf32> to vector<8x32xf32>
    %155 = arith.mulf %152, %129 : vector<8x32xf32>
    %156 = arith.mulf %151, %153 : vector<8x32xf32>
    %157 = arith.addf %155, %156 : vector<8x32xf32>
    %158 = math.tanh %157 : vector<8x32xf32>
    %159 = arith.mulf %154, %158 : vector<8x32xf32>
    %160 = vector.extract_strided_slice %159 {offsets = [0, 0], sizes = [4, 32], strides = [1, 1]} : vector<8x32xf32> to vector<4x32xf32>
    %c16_53 = arith.constant 16 : index
    %c0_54 = arith.constant 0 : index
    %161 = vector.load %arg15[%c16_53, %c0_54] : memref<32x64xf32, #tpu.memory_space<vmem>>, vector<4x32xf32>
    tpu.vector_store %arg15[%c16_53, %c0_54], %160 {strides = array<i32>} : memref<32x64xf32, #tpu.memory_space<vmem>>, vector<4x32xf32>,
    %162 = vector.extract_strided_slice %159 {offsets = [4, 0], sizes = [4, 32], strides = [1, 1]} : vector<8x32xf32> to vector<4x32xf32>
    %c12_55 = arith.constant 12 : index
    %c32_56 = arith.constant 32 : index
    %163 = vector.load %arg15[%c12_55, %c32_56] : memref<32x64xf32, #tpu.memory_space<vmem>>, vector<4x32xf32>
    tpu.vector_store %arg15[%c12_55, %c32_56], %162 {strides = array<i32>} : memref<32x64xf32, #tpu.memory_space<vmem>>, vector<4x32xf32>,
    %c20_57 = arith.constant 20 : index
    %c0_58 = arith.constant 0 : index
    %164 = vector.load %arg14[%c20_57, %c0_58] : memref<32x256xf32, #tpu.memory_space<vmem>>, vector<4x128xf32>
    %c8_59 = arith.constant 8 : index
    %c128_60 = arith.constant 128 : index
    %165 = vector.load %arg14[%c8_59, %c128_60] : memref<32x256xf32, #tpu.memory_space<vmem>>, vector<4x128xf32>
    %166 = tpu.concatenate %164, %165 in 0 : vector<4x128xf32>, vector<4x128xf32> -> vector<8x128xf32>
    %cst_61 = arith.constant dense<0.000000e+00> : vector<8x256xf32>
    %167 = tpu.matmul %159, %12, %cst_61 {dimension_numbers = #tpu.dot_dimension_numbers<[1], [0], [0], [1], [0, 0, 1, 1], [], []>} : vector<8x32xf32>, vector<32x256xf32>, vector<8x256xf32> -> vector<8x256xf32>
    %168 = vector.extract_strided_slice %167 {offsets = [0, 0], sizes = [8, 128], strides = [1, 1]} : vector<8x256xf32> to vector<8x128xf32>
    %169 = vector.extract_strided_slice %167 {offsets = [0, 128], sizes = [8, 128], strides = [1, 1]} : vector<8x256xf32> to vector<8x128xf32>
    %170 = arith.select %17, %168, %169 : vector<8x128xi1>, vector<8x128xf32>
    %171 = arith.addf %166, %170 : vector<8x128xf32>
    %172 = math.tanh %171 : vector<8x128xf32>
    %173 = arith.negf %171 : vector<8x128xf32>
    %174 = math.exp %173 : vector<8x128xf32>
    %cst_62 = arith.constant 1.000000e+00 : f32
    %175 = vector.broadcast %cst_62 : f32 to vector<8x128xf32>
    %176 = arith.addf %175, %174 : vector<8x128xf32>
    %177 = arith.divf %175, %176 : vector<8x128xf32>
    %178 = arith.select %23, %172, %177 : vector<8x128xi1>, vector<8x128xf32>
    %179 = vector.extract_strided_slice %178 {offsets = [0, 0], sizes = [8, 32], strides = [1, 1]} : vector<8x128xf32> to vector<8x32xf32>
    %180 = vector.extract_strided_slice %178 {offsets = [0, 32], sizes = [8, 32], strides = [1, 1]} : vector<8x128xf32> to vector<8x32xf32>
    %181 = vector.extract_strided_slice %178 {offsets = [0, 64], sizes = [8, 32], strides = [1, 1]} : vector<8x128xf32> to vector<8x32xf32>
    %182 = vector.extract_strided_slice %178 {offsets = [0, 96], sizes = [8, 32], strides = [1, 1]} : vector<8x128xf32> to vector<8x32xf32>
    %183 = arith.mulf %180, %157 : vector<8x32xf32>
    %184 = arith.mulf %179, %181 : vector<8x32xf32>
    %185 = arith.addf %183, %184 : vector<8x32xf32>
    %186 = math.tanh %185 : vector<8x32xf32>
    %187 = arith.mulf %182, %186 : vector<8x32xf32>
    %188 = vector.extract_strided_slice %187 {offsets = [0, 0], sizes = [4, 32], strides = [1, 1]} : vector<8x32xf32> to vector<4x32xf32>
    %c20_63 = arith.constant 20 : index
    %c0_64 = arith.constant 0 : index
    %189 = vector.load %arg15[%c20_63, %c0_64] : memref<32x64xf32, #tpu.memory_space<vmem>>, vector<4x32xf32>
    tpu.vector_store %arg15[%c20_63, %c0_64], %188 {strides = array<i32>} : memref<32x64xf32, #tpu.memory_space<vmem>>, vector<4x32xf32>,
    %190 = vector.extract_strided_slice %187 {offsets = [4, 0], sizes = [4, 32], strides = [1, 1]} : vector<8x32xf32> to vector<4x32xf32>
    %c8_65 = arith.constant 8 : index
    %c32_66 = arith.constant 32 : index
    %191 = vector.load %arg15[%c8_65, %c32_66] : memref<32x64xf32, #tpu.memory_space<vmem>>, vector<4x32xf32>
    tpu.vector_store %arg15[%c8_65, %c32_66], %190 {strides = array<i32>} : memref<32x64xf32, #tpu.memory_space<vmem>>, vector<4x32xf32>,
    %c24_67 = arith.constant 24 : index
    %c0_68 = arith.constant 0 : index
    %192 = vector.load %arg14[%c24_67, %c0_68] : memref<32x256xf32, #tpu.memory_space<vmem>>, vector<4x128xf32>
    %c4_69 = arith.constant 4 : index
    %c128_70 = arith.constant 128 : index
    %193 = vector.load %arg14[%c4_69, %c128_70] : memref<32x256xf32, #tpu.memory_space<vmem>>, vector<4x128xf32>
    %194 = tpu.concatenate %192, %193 in 0 : vector<4x128xf32>, vector<4x128xf32> -> vector<8x128xf32>
    %cst_71 = arith.constant dense<0.000000e+00> : vector<8x256xf32>
    %195 = tpu.matmul %187, %12, %cst_71 {dimension_numbers = #tpu.dot_dimension_numbers<[1], [0], [0], [1], [0, 0, 1, 1], [], []>} : vector<8x32xf32>, vector<32x256xf32>, vector<8x256xf32> -> vector<8x256xf32>
    %196 = vector.extract_strided_slice %195 {offsets = [0, 0], sizes = [8, 128], strides = [1, 1]} : vector<8x256xf32> to vector<8x128xf32>
    %197 = vector.extract_strided_slice %195 {offsets = [0, 128], sizes = [8, 128], strides = [1, 1]} : vector<8x256xf32> to vector<8x128xf32>
    %198 = arith.select %17, %196, %197 : vector<8x128xi1>, vector<8x128xf32>
    %199 = arith.addf %194, %198 : vector<8x128xf32>
    %200 = math.tanh %199 : vector<8x128xf32>
    %201 = arith.negf %199 : vector<8x128xf32>
    %202 = math.exp %201 : vector<8x128xf32>
    %cst_72 = arith.constant 1.000000e+00 : f32
    %203 = vector.broadcast %cst_72 : f32 to vector<8x128xf32>
    %204 = arith.addf %203, %202 : vector<8x128xf32>
    %205 = arith.divf %203, %204 : vector<8x128xf32>
    %206 = arith.select %23, %200, %205 : vector<8x128xi1>, vector<8x128xf32>
    %207 = vector.extract_strided_slice %206 {offsets = [0, 0], sizes = [8, 32], strides = [1, 1]} : vector<8x128xf32> to vector<8x32xf32>
    %208 = vector.extract_strided_slice %206 {offsets = [0, 32], sizes = [8, 32], strides = [1, 1]} : vector<8x128xf32> to vector<8x32xf32>
    %209 = vector.extract_strided_slice %206 {offsets = [0, 64], sizes = [8, 32], strides = [1, 1]} : vector<8x128xf32> to vector<8x32xf32>
    %210 = vector.extract_strided_slice %206 {offsets = [0, 96], sizes = [8, 32], strides = [1, 1]} : vector<8x128xf32> to vector<8x32xf32>
    %211 = arith.mulf %208, %185 : vector<8x32xf32>
    %212 = arith.mulf %207, %209 : vector<8x32xf32>
    %213 = arith.addf %211, %212 : vector<8x32xf32>
    %214 = math.tanh %213 : vector<8x32xf32>
    %215 = arith.mulf %210, %214 : vector<8x32xf32>
    %216 = vector.extract_strided_slice %215 {offsets = [0, 0], sizes = [4, 32], strides = [1, 1]} : vector<8x32xf32> to vector<4x32xf32>
    %c24_73 = arith.constant 24 : index
    %c0_74 = arith.constant 0 : index
    %217 = vector.load %arg15[%c24_73, %c0_74] : memref<32x64xf32, #tpu.memory_space<vmem>>, vector<4x32xf32>
    tpu.vector_store %arg15[%c24_73, %c0_74], %216 {strides = array<i32>} : memref<32x64xf32, #tpu.memory_space<vmem>>, vector<4x32xf32>,
    %218 = vector.extract_strided_slice %215 {offsets = [4, 0], sizes = [4, 32], strides = [1, 1]} : vector<8x32xf32> to vector<4x32xf32>
    %c4_75 = arith.constant 4 : index
    %c32_76 = arith.constant 32 : index
    %219 = vector.load %arg15[%c4_75, %c32_76] : memref<32x64xf32, #tpu.memory_space<vmem>>, vector<4x32xf32>
    tpu.vector_store %arg15[%c4_75, %c32_76], %218 {strides = array<i32>} : memref<32x64xf32, #tpu.memory_space<vmem>>, vector<4x32xf32>,
    %c28_77 = arith.constant 28 : index
    %c0_78 = arith.constant 0 : index
    %220 = vector.load %arg14[%c28_77, %c0_78] : memref<32x256xf32, #tpu.memory_space<vmem>>, vector<4x128xf32>
    %c0_79 = arith.constant 0 : index
    %c128_80 = arith.constant 128 : index
    %221 = vector.load %arg14[%c0_79, %c128_80] : memref<32x256xf32, #tpu.memory_space<vmem>>, vector<4x128xf32>
    %222 = tpu.concatenate %220, %221 in 0 : vector<4x128xf32>, vector<4x128xf32> -> vector<8x128xf32>
    %cst_81 = arith.constant dense<0.000000e+00> : vector<8x256xf32>
    %223 = tpu.matmul %215, %12, %cst_81 {dimension_numbers = #tpu.dot_dimension_numbers<[1], [0], [0], [1], [0, 0, 1, 1], [], []>} : vector<8x32xf32>, vector<32x256xf32>, vector<8x256xf32> -> vector<8x256xf32>
    %224 = vector.extract_strided_slice %223 {offsets = [0, 0], sizes = [8, 128], strides = [1, 1]} : vector<8x256xf32> to vector<8x128xf32>
    %225 = vector.extract_strided_slice %223 {offsets = [0, 128], sizes = [8, 128], strides = [1, 1]} : vector<8x256xf32> to vector<8x128xf32>
    %226 = arith.select %17, %224, %225 : vector<8x128xi1>, vector<8x128xf32>
    %227 = arith.addf %222, %226 : vector<8x128xf32>
    %228 = math.tanh %227 : vector<8x128xf32>
    %229 = arith.negf %227 : vector<8x128xf32>
    %230 = math.exp %229 : vector<8x128xf32>
    %cst_82 = arith.constant 1.000000e+00 : f32
    %231 = vector.broadcast %cst_82 : f32 to vector<8x128xf32>
    %232 = arith.addf %231, %230 : vector<8x128xf32>
    %233 = arith.divf %231, %232 : vector<8x128xf32>
    %234 = arith.select %23, %228, %233 : vector<8x128xi1>, vector<8x128xf32>
    %235 = vector.extract_strided_slice %234 {offsets = [0, 0], sizes = [8, 32], strides = [1, 1]} : vector<8x128xf32> to vector<8x32xf32>
    %236 = vector.extract_strided_slice %234 {offsets = [0, 32], sizes = [8, 32], strides = [1, 1]} : vector<8x128xf32> to vector<8x32xf32>
    %237 = vector.extract_strided_slice %234 {offsets = [0, 64], sizes = [8, 32], strides = [1, 1]} : vector<8x128xf32> to vector<8x32xf32>
    %238 = vector.extract_strided_slice %234 {offsets = [0, 96], sizes = [8, 32], strides = [1, 1]} : vector<8x128xf32> to vector<8x32xf32>
    %239 = arith.mulf %236, %213 : vector<8x32xf32>
    %240 = arith.mulf %235, %237 : vector<8x32xf32>
    %241 = arith.addf %239, %240 : vector<8x32xf32>
    %242 = math.tanh %241 : vector<8x32xf32>
    %243 = arith.mulf %238, %242 : vector<8x32xf32>
    %244 = vector.extract_strided_slice %243 {offsets = [0, 0], sizes = [4, 32], strides = [1, 1]} : vector<8x32xf32> to vector<4x32xf32>
    %c28_83 = arith.constant 28 : index
    %c0_84 = arith.constant 0 : index
    %245 = vector.load %arg15[%c28_83, %c0_84] : memref<32x64xf32, #tpu.memory_space<vmem>>, vector<4x32xf32>
    tpu.vector_store %arg15[%c28_83, %c0_84], %244 {strides = array<i32>} : memref<32x64xf32, #tpu.memory_space<vmem>>, vector<4x32xf32>,
    %246 = vector.extract_strided_slice %243 {offsets = [4, 0], sizes = [4, 32], strides = [1, 1]} : vector<8x32xf32> to vector<4x32xf32>
    %c0_85 = arith.constant 0 : index
    %c32_86 = arith.constant 32 : index
    %247 = vector.load %arg15[%c0_85, %c32_86] : memref<32x64xf32, #tpu.memory_space<vmem>>, vector<4x32xf32>
    tpu.vector_store %arg15[%c0_85, %c32_86], %246 {strides = array<i32>} : memref<32x64xf32, #tpu.memory_space<vmem>>, vector<4x32xf32>,
    %248 = vector.extract_strided_slice %241 {offsets = [0, 0], sizes = [4, 32], strides = [1, 1]} : vector<8x32xf32> to vector<4x32xf32>
    %249 = vector.extract_strided_slice %241 {offsets = [4, 0], sizes = [4, 32], strides = [1, 1]} : vector<8x32xf32> to vector<4x32xf32>
    %c0_87 = arith.constant 0 : index
    %c0_88 = arith.constant 0 : index
    %250 = vector.load %arg15[%c0_87, %c0_88] : memref<32x64xf32, #tpu.memory_space<vmem>>, vector<32x64xf32>
    %c0_89 = arith.constant 0 : index
    %c0_90 = arith.constant 0 : index
    %251 = vector.load %arg6[%c0_89, %c0_90] : memref<64x256xf32, #tpu.memory_space<vmem>>, vector<64x256xf32>
    %cst_91 = arith.constant dense<0.000000e+00> : vector<32x256xf32>
    %252 = tpu.matmul %250, %251, %cst_91 {dimension_numbers = #tpu.dot_dimension_numbers<[1], [0], [0], [1], [0, 0, 1, 1], [], []>} : vector<32x64xf32>, vector<64x256xf32>, vector<32x256xf32> -> vector<32x256xf32>
    %c0_92 = arith.constant 0 : index
    %c0_93 = arith.constant 0 : index
    %253 = vector.load %arg8[%c0_92, %c0_93] : memref<1x256xf32, #tpu.memory_space<vmem>>, vector<1x256xf32>
    %254 = vector.broadcast %253 : vector<1x256xf32> to vector<32x256xf32>
    %255 = arith.addf %252, %254 : vector<32x256xf32>
    %c0_94 = arith.constant 0 : index
    %c0_95 = arith.constant 0 : index
    %256 = vector.load %arg14[%c0_94, %c0_95] : memref<32x256xf32, #tpu.memory_space<vmem>>, vector<32x256xf32>
    tpu.vector_store %arg14[%c0_94, %c0_95], %255 {strides = array<i32>} : memref<32x256xf32, #tpu.memory_space<vmem>>, vector<32x256xf32>,
    %c0_96 = arith.constant 0 : index
    %c0_97 = arith.constant 0 : index
    %257 = vector.load %arg7[%c0_96, %c0_97] : memref<32x256xf32, #tpu.memory_space<vmem>>, vector<32x256xf32>
    %cst_98 = arith.constant 0.000000e+00 : f32
    %258 = vector.broadcast %cst_98 : f32 to vector<8x32xf32>
    %cst_99 = arith.constant 0.000000e+00 : f32
    %259 = vector.broadcast %cst_99 : f32 to vector<8x32xf32>
    %260 = tpu.iota {dimensions = array<i32: 0>} : vector<8x128xi32>
    %c4_i32_100 = arith.constant 4 : i32
    %261 = vector.broadcast %c4_i32_100 : i32 to vector<8x128xi32>
    %262 = arith.cmpi slt, %260, %261 : vector<8x128xi32>
    %263 = tpu.iota {dimensions = array<i32: 1>} : vector<8x128xi32>
    %c64_i32_101 = arith.constant 64 : i32
    %264 = vector.broadcast %c64_i32_101 : i32 to vector<8x128xi32>
    %265 = arith.cmpi sge, %263, %264 : vector<8x128xi32>
    %c96_i32_102 = arith.constant 96 : i32
    %266 = vector.broadcast %c96_i32_102 : i32 to vector<8x128xi32>
    %267 = arith.cmpi slt, %263, %266 : vector<8x128xi32>
    %268 = arith.andi %265, %267 : vector<8x128xi1>
    %c0_103 = arith.constant 0 : index
    %c0_104 = arith.constant 0 : index
    %269 = vector.load %arg14[%c0_103, %c0_104] : memref<32x256xf32, #tpu.memory_space<vmem>>, vector<4x128xf32>
    %c28_105 = arith.constant 28 : index
    %c128_106 = arith.constant 128 : index
    %270 = vector.load %arg14[%c28_105, %c128_106] : memref<32x256xf32, #tpu.memory_space<vmem>>, vector<4x128xf32>
    %271 = tpu.concatenate %269, %270 in 0 : vector<4x128xf32>, vector<4x128xf32> -> vector<8x128xf32>
    %cst_107 = arith.constant dense<0.000000e+00> : vector<8x256xf32>
    %272 = tpu.matmul %258, %257, %cst_107 {dimension_numbers = #tpu.dot_dimension_numbers<[1], [0], [0], [1], [0, 0, 1, 1], [], []>} : vector<8x32xf32>, vector<32x256xf32>, vector<8x256xf32> -> vector<8x256xf32>
    %273 = vector.extract_strided_slice %272 {offsets = [0, 0], sizes = [8, 128], strides = [1, 1]} : vector<8x256xf32> to vector<8x128xf32>
    %274 = vector.extract_strided_slice %272 {offsets = [0, 128], sizes = [8, 128], strides = [1, 1]} : vector<8x256xf32> to vector<8x128xf32>
    %275 = arith.select %262, %273, %274 : vector<8x128xi1>, vector<8x128xf32>
    %276 = arith.addf %271, %275 : vector<8x128xf32>
    %277 = math.tanh %276 : vector<8x128xf32>
    %278 = arith.negf %276 : vector<8x128xf32>
    %279 = math.exp %278 : vector<8x128xf32>
    %cst_108 = arith.constant 1.000000e+00 : f32
    %280 = vector.broadcast %cst_108 : f32 to vector<8x128xf32>
    %281 = arith.addf %280, %279 : vector<8x128xf32>
    %282 = arith.divf %280, %281 : vector<8x128xf32>
    %283 = arith.select %268, %277, %282 : vector<8x128xi1>, vector<8x128xf32>
    %284 = vector.extract_strided_slice %283 {offsets = [0, 0], sizes = [8, 32], strides = [1, 1]} : vector<8x128xf32> to vector<8x32xf32>
    %285 = vector.extract_strided_slice %283 {offsets = [0, 32], sizes = [8, 32], strides = [1, 1]} : vector<8x128xf32> to vector<8x32xf32>
    %286 = vector.extract_strided_slice %283 {offsets = [0, 64], sizes = [8, 32], strides = [1, 1]} : vector<8x128xf32> to vector<8x32xf32>
    %287 = vector.extract_strided_slice %283 {offsets = [0, 96], sizes = [8, 32], strides = [1, 1]} : vector<8x128xf32> to vector<8x32xf32>
    %288 = arith.mulf %285, %259 : vector<8x32xf32>
    %289 = arith.mulf %284, %286 : vector<8x32xf32>
    %290 = arith.addf %288, %289 : vector<8x32xf32>
    %291 = math.tanh %290 : vector<8x32xf32>
    %292 = arith.mulf %287, %291 : vector<8x32xf32>
    %c4_109 = arith.constant 4 : index
    %c0_110 = arith.constant 0 : index
    %293 = vector.load %arg14[%c4_109, %c0_110] : memref<32x256xf32, #tpu.memory_space<vmem>>, vector<4x128xf32>
    %c24_111 = arith.constant 24 : index
    %c128_112 = arith.constant 128 : index
    %294 = vector.load %arg14[%c24_111, %c128_112] : memref<32x256xf32, #tpu.memory_space<vmem>>, vector<4x128xf32>
    %295 = tpu.concatenate %293, %294 in 0 : vector<4x128xf32>, vector<4x128xf32> -> vector<8x128xf32>
    %cst_113 = arith.constant dense<0.000000e+00> : vector<8x256xf32>
    %296 = tpu.matmul %292, %257, %cst_113 {dimension_numbers = #tpu.dot_dimension_numbers<[1], [0], [0], [1], [0, 0, 1, 1], [], []>} : vector<8x32xf32>, vector<32x256xf32>, vector<8x256xf32> -> vector<8x256xf32>
    %297 = vector.extract_strided_slice %296 {offsets = [0, 0], sizes = [8, 128], strides = [1, 1]} : vector<8x256xf32> to vector<8x128xf32>
    %298 = vector.extract_strided_slice %296 {offsets = [0, 128], sizes = [8, 128], strides = [1, 1]} : vector<8x256xf32> to vector<8x128xf32>
    %299 = arith.select %262, %297, %298 : vector<8x128xi1>, vector<8x128xf32>
    %300 = arith.addf %295, %299 : vector<8x128xf32>
    %301 = math.tanh %300 : vector<8x128xf32>
    %302 = arith.negf %300 : vector<8x128xf32>
    %303 = math.exp %302 : vector<8x128xf32>
    %cst_114 = arith.constant 1.000000e+00 : f32
    %304 = vector.broadcast %cst_114 : f32 to vector<8x128xf32>
    %305 = arith.addf %304, %303 : vector<8x128xf32>
    %306 = arith.divf %304, %305 : vector<8x128xf32>
    %307 = arith.select %268, %301, %306 : vector<8x128xi1>, vector<8x128xf32>
    %308 = vector.extract_strided_slice %307 {offsets = [0, 0], sizes = [8, 32], strides = [1, 1]} : vector<8x128xf32> to vector<8x32xf32>
    %309 = vector.extract_strided_slice %307 {offsets = [0, 32], sizes = [8, 32], strides = [1, 1]} : vector<8x128xf32> to vector<8x32xf32>
    %310 = vector.extract_strided_slice %307 {offsets = [0, 64], sizes = [8, 32], strides = [1, 1]} : vector<8x128xf32> to vector<8x32xf32>
    %311 = vector.extract_strided_slice %307 {offsets = [0, 96], sizes = [8, 32], strides = [1, 1]} : vector<8x128xf32> to vector<8x32xf32>
    %312 = arith.mulf %309, %290 : vector<8x32xf32>
    %313 = arith.mulf %308, %310 : vector<8x32xf32>
    %314 = arith.addf %312, %313 : vector<8x32xf32>
    %315 = math.tanh %314 : vector<8x32xf32>
    %316 = arith.mulf %311, %315 : vector<8x32xf32>
    %c8_115 = arith.constant 8 : index
    %c0_116 = arith.constant 0 : index
    %317 = vector.load %arg14[%c8_115, %c0_116] : memref<32x256xf32, #tpu.memory_space<vmem>>, vector<4x128xf32>
    %c20_117 = arith.constant 20 : index
    %c128_118 = arith.constant 128 : index
    %318 = vector.load %arg14[%c20_117, %c128_118] : memref<32x256xf32, #tpu.memory_space<vmem>>, vector<4x128xf32>
    %319 = tpu.concatenate %317, %318 in 0 : vector<4x128xf32>, vector<4x128xf32> -> vector<8x128xf32>
    %cst_119 = arith.constant dense<0.000000e+00> : vector<8x256xf32>
    %320 = tpu.matmul %316, %257, %cst_119 {dimension_numbers = #tpu.dot_dimension_numbers<[1], [0], [0], [1], [0, 0, 1, 1], [], []>} : vector<8x32xf32>, vector<32x256xf32>, vector<8x256xf32> -> vector<8x256xf32>
    %321 = vector.extract_strided_slice %320 {offsets = [0, 0], sizes = [8, 128], strides = [1, 1]} : vector<8x256xf32> to vector<8x128xf32>
    %322 = vector.extract_strided_slice %320 {offsets = [0, 128], sizes = [8, 128], strides = [1, 1]} : vector<8x256xf32> to vector<8x128xf32>
    %323 = arith.select %262, %321, %322 : vector<8x128xi1>, vector<8x128xf32>
    %324 = arith.addf %319, %323 : vector<8x128xf32>
    %325 = math.tanh %324 : vector<8x128xf32>
    %326 = arith.negf %324 : vector<8x128xf32>
    %327 = math.exp %326 : vector<8x128xf32>
    %cst_120 = arith.constant 1.000000e+00 : f32
    %328 = vector.broadcast %cst_120 : f32 to vector<8x128xf32>
    %329 = arith.addf %328, %327 : vector<8x128xf32>
    %330 = arith.divf %328, %329 : vector<8x128xf32>
    %331 = arith.select %268, %325, %330 : vector<8x128xi1>, vector<8x128xf32>
    %332 = vector.extract_strided_slice %331 {offsets = [0, 0], sizes = [8, 32], strides = [1, 1]} : vector<8x128xf32> to vector<8x32xf32>
    %333 = vector.extract_strided_slice %331 {offsets = [0, 32], sizes = [8, 32], strides = [1, 1]} : vector<8x128xf32> to vector<8x32xf32>
    %334 = vector.extract_strided_slice %331 {offsets = [0, 64], sizes = [8, 32], strides = [1, 1]} : vector<8x128xf32> to vector<8x32xf32>
    %335 = vector.extract_strided_slice %331 {offsets = [0, 96], sizes = [8, 32], strides = [1, 1]} : vector<8x128xf32> to vector<8x32xf32>
    %336 = arith.mulf %333, %314 : vector<8x32xf32>
    %337 = arith.mulf %332, %334 : vector<8x32xf32>
    %338 = arith.addf %336, %337 : vector<8x32xf32>
    %339 = math.tanh %338 : vector<8x32xf32>
    %340 = arith.mulf %335, %339 : vector<8x32xf32>
    %c12_121 = arith.constant 12 : index
    %c0_122 = arith.constant 0 : index
    %341 = vector.load %arg14[%c12_121, %c0_122] : memref<32x256xf32, #tpu.memory_space<vmem>>, vector<4x128xf32>
    %c16_123 = arith.constant 16 : index
    %c128_124 = arith.constant 128 : index
    %342 = vector.load %arg14[%c16_123, %c128_124] : memref<32x256xf32, #tpu.memory_space<vmem>>, vector<4x128xf32>
    %343 = tpu.concatenate %341, %342 in 0 : vector<4x128xf32>, vector<4x128xf32> -> vector<8x128xf32>
    %cst_125 = arith.constant dense<0.000000e+00> : vector<8x256xf32>
    %344 = tpu.matmul %340, %257, %cst_125 {dimension_numbers = #tpu.dot_dimension_numbers<[1], [0], [0], [1], [0, 0, 1, 1], [], []>} : vector<8x32xf32>, vector<32x256xf32>, vector<8x256xf32> -> vector<8x256xf32>
    %345 = vector.extract_strided_slice %344 {offsets = [0, 0], sizes = [8, 128], strides = [1, 1]} : vector<8x256xf32> to vector<8x128xf32>
    %346 = vector.extract_strided_slice %344 {offsets = [0, 128], sizes = [8, 128], strides = [1, 1]} : vector<8x256xf32> to vector<8x128xf32>
    %347 = arith.select %262, %345, %346 : vector<8x128xi1>, vector<8x128xf32>
    %348 = arith.addf %343, %347 : vector<8x128xf32>
    %349 = math.tanh %348 : vector<8x128xf32>
    %350 = arith.negf %348 : vector<8x128xf32>
    %351 = math.exp %350 : vector<8x128xf32>
    %cst_126 = arith.constant 1.000000e+00 : f32
    %352 = vector.broadcast %cst_126 : f32 to vector<8x128xf32>
    %353 = arith.addf %352, %351 : vector<8x128xf32>
    %354 = arith.divf %352, %353 : vector<8x128xf32>
    %355 = arith.select %268, %349, %354 : vector<8x128xi1>, vector<8x128xf32>
    %356 = vector.extract_strided_slice %355 {offsets = [0, 0], sizes = [8, 32], strides = [1, 1]} : vector<8x128xf32> to vector<8x32xf32>
    %357 = vector.extract_strided_slice %355 {offsets = [0, 32], sizes = [8, 32], strides = [1, 1]} : vector<8x128xf32> to vector<8x32xf32>
    %358 = vector.extract_strided_slice %355 {offsets = [0, 64], sizes = [8, 32], strides = [1, 1]} : vector<8x128xf32> to vector<8x32xf32>
    %359 = vector.extract_strided_slice %355 {offsets = [0, 96], sizes = [8, 32], strides = [1, 1]} : vector<8x128xf32> to vector<8x32xf32>
    %360 = arith.mulf %357, %338 : vector<8x32xf32>
    %361 = arith.mulf %356, %358 : vector<8x32xf32>
    %362 = arith.addf %360, %361 : vector<8x32xf32>
    %363 = math.tanh %362 : vector<8x32xf32>
    %364 = arith.mulf %359, %363 : vector<8x32xf32>
    %c16_127 = arith.constant 16 : index
    %c0_128 = arith.constant 0 : index
    %365 = vector.load %arg14[%c16_127, %c0_128] : memref<32x256xf32, #tpu.memory_space<vmem>>, vector<4x128xf32>
    %c12_129 = arith.constant 12 : index
    %c128_130 = arith.constant 128 : index
    %366 = vector.load %arg14[%c12_129, %c128_130] : memref<32x256xf32, #tpu.memory_space<vmem>>, vector<4x128xf32>
    %367 = tpu.concatenate %365, %366 in 0 : vector<4x128xf32>, vector<4x128xf32> -> vector<8x128xf32>
    %cst_131 = arith.constant dense<0.000000e+00> : vector<8x256xf32>
    %368 = tpu.matmul %364, %257, %cst_131 {dimension_numbers = #tpu.dot_dimension_numbers<[1], [0], [0], [1], [0, 0, 1, 1], [], []>} : vector<8x32xf32>, vector<32x256xf32>, vector<8x256xf32> -> vector<8x256xf32>
    %369 = vector.extract_strided_slice %368 {offsets = [0, 0], sizes = [8, 128], strides = [1, 1]} : vector<8x256xf32> to vector<8x128xf32>
    %370 = vector.extract_strided_slice %368 {offsets = [0, 128], sizes = [8, 128], strides = [1, 1]} : vector<8x256xf32> to vector<8x128xf32>
    %371 = arith.select %262, %369, %370 : vector<8x128xi1>, vector<8x128xf32>
    %372 = arith.addf %367, %371 : vector<8x128xf32>
    %373 = math.tanh %372 : vector<8x128xf32>
    %374 = arith.negf %372 : vector<8x128xf32>
    %375 = math.exp %374 : vector<8x128xf32>
    %cst_132 = arith.constant 1.000000e+00 : f32
    %376 = vector.broadcast %cst_132 : f32 to vector<8x128xf32>
    %377 = arith.addf %376, %375 : vector<8x128xf32>
    %378 = arith.divf %376, %377 : vector<8x128xf32>
    %379 = arith.select %268, %373, %378 : vector<8x128xi1>, vector<8x128xf32>
    %380 = vector.extract_strided_slice %379 {offsets = [0, 0], sizes = [8, 32], strides = [1, 1]} : vector<8x128xf32> to vector<8x32xf32>
    %381 = vector.extract_strided_slice %379 {offsets = [0, 32], sizes = [8, 32], strides = [1, 1]} : vector<8x128xf32> to vector<8x32xf32>
    %382 = vector.extract_strided_slice %379 {offsets = [0, 64], sizes = [8, 32], strides = [1, 1]} : vector<8x128xf32> to vector<8x32xf32>
    %383 = vector.extract_strided_slice %379 {offsets = [0, 96], sizes = [8, 32], strides = [1, 1]} : vector<8x128xf32> to vector<8x32xf32>
    %384 = arith.mulf %381, %362 : vector<8x32xf32>
    %385 = arith.mulf %380, %382 : vector<8x32xf32>
    %386 = arith.addf %384, %385 : vector<8x32xf32>
    %387 = math.tanh %386 : vector<8x32xf32>
    %388 = arith.mulf %383, %387 : vector<8x32xf32>
    %c20_133 = arith.constant 20 : index
    %c0_134 = arith.constant 0 : index
    %389 = vector.load %arg14[%c20_133, %c0_134] : memref<32x256xf32, #tpu.memory_space<vmem>>, vector<4x128xf32>
    %c8_135 = arith.constant 8 : index
    %c128_136 = arith.constant 128 : index
    %390 = vector.load %arg14[%c8_135, %c128_136] : memref<32x256xf32, #tpu.memory_space<vmem>>, vector<4x128xf32>
    %391 = tpu.concatenate %389, %390 in 0 : vector<4x128xf32>, vector<4x128xf32> -> vector<8x128xf32>
    %cst_137 = arith.constant dense<0.000000e+00> : vector<8x256xf32>
    %392 = tpu.matmul %388, %257, %cst_137 {dimension_numbers = #tpu.dot_dimension_numbers<[1], [0], [0], [1], [0, 0, 1, 1], [], []>} : vector<8x32xf32>, vector<32x256xf32>, vector<8x256xf32> -> vector<8x256xf32>
    %393 = vector.extract_strided_slice %392 {offsets = [0, 0], sizes = [8, 128], strides = [1, 1]} : vector<8x256xf32> to vector<8x128xf32>
    %394 = vector.extract_strided_slice %392 {offsets = [0, 128], sizes = [8, 128], strides = [1, 1]} : vector<8x256xf32> to vector<8x128xf32>
    %395 = arith.select %262, %393, %394 : vector<8x128xi1>, vector<8x128xf32>
    %396 = arith.addf %391, %395 : vector<8x128xf32>
    %397 = math.tanh %396 : vector<8x128xf32>
    %398 = arith.negf %396 : vector<8x128xf32>
    %399 = math.exp %398 : vector<8x128xf32>
    %cst_138 = arith.constant 1.000000e+00 : f32
    %400 = vector.broadcast %cst_138 : f32 to vector<8x128xf32>
    %401 = arith.addf %400, %399 : vector<8x128xf32>
    %402 = arith.divf %400, %401 : vector<8x128xf32>
    %403 = arith.select %268, %397, %402 : vector<8x128xi1>, vector<8x128xf32>
    %404 = vector.extract_strided_slice %403 {offsets = [0, 0], sizes = [8, 32], strides = [1, 1]} : vector<8x128xf32> to vector<8x32xf32>
    %405 = vector.extract_strided_slice %403 {offsets = [0, 32], sizes = [8, 32], strides = [1, 1]} : vector<8x128xf32> to vector<8x32xf32>
    %406 = vector.extract_strided_slice %403 {offsets = [0, 64], sizes = [8, 32], strides = [1, 1]} : vector<8x128xf32> to vector<8x32xf32>
    %407 = vector.extract_strided_slice %403 {offsets = [0, 96], sizes = [8, 32], strides = [1, 1]} : vector<8x128xf32> to vector<8x32xf32>
    %408 = arith.mulf %405, %386 : vector<8x32xf32>
    %409 = arith.mulf %404, %406 : vector<8x32xf32>
    %410 = arith.addf %408, %409 : vector<8x32xf32>
    %411 = math.tanh %410 : vector<8x32xf32>
    %412 = arith.mulf %407, %411 : vector<8x32xf32>
    %c24_139 = arith.constant 24 : index
    %c0_140 = arith.constant 0 : index
    %413 = vector.load %arg14[%c24_139, %c0_140] : memref<32x256xf32, #tpu.memory_space<vmem>>, vector<4x128xf32>
    %c4_141 = arith.constant 4 : index
    %c128_142 = arith.constant 128 : index
    %414 = vector.load %arg14[%c4_141, %c128_142] : memref<32x256xf32, #tpu.memory_space<vmem>>, vector<4x128xf32>
    %415 = tpu.concatenate %413, %414 in 0 : vector<4x128xf32>, vector<4x128xf32> -> vector<8x128xf32>
    %cst_143 = arith.constant dense<0.000000e+00> : vector<8x256xf32>
    %416 = tpu.matmul %412, %257, %cst_143 {dimension_numbers = #tpu.dot_dimension_numbers<[1], [0], [0], [1], [0, 0, 1, 1], [], []>} : vector<8x32xf32>, vector<32x256xf32>, vector<8x256xf32> -> vector<8x256xf32>
    %417 = vector.extract_strided_slice %416 {offsets = [0, 0], sizes = [8, 128], strides = [1, 1]} : vector<8x256xf32> to vector<8x128xf32>
    %418 = vector.extract_strided_slice %416 {offsets = [0, 128], sizes = [8, 128], strides = [1, 1]} : vector<8x256xf32> to vector<8x128xf32>
    %419 = arith.select %262, %417, %418 : vector<8x128xi1>, vector<8x128xf32>
    %420 = arith.addf %415, %419 : vector<8x128xf32>
    %421 = math.tanh %420 : vector<8x128xf32>
    %422 = arith.negf %420 : vector<8x128xf32>
    %423 = math.exp %422 : vector<8x128xf32>
    %cst_144 = arith.constant 1.000000e+00 : f32
    %424 = vector.broadcast %cst_144 : f32 to vector<8x128xf32>
    %425 = arith.addf %424, %423 : vector<8x128xf32>
    %426 = arith.divf %424, %425 : vector<8x128xf32>
    %427 = arith.select %268, %421, %426 : vector<8x128xi1>, vector<8x128xf32>
    %428 = vector.extract_strided_slice %427 {offsets = [0, 0], sizes = [8, 32], strides = [1, 1]} : vector<8x128xf32> to vector<8x32xf32>
    %429 = vector.extract_strided_slice %427 {offsets = [0, 32], sizes = [8, 32], strides = [1, 1]} : vector<8x128xf32> to vector<8x32xf32>
    %430 = vector.extract_strided_slice %427 {offsets = [0, 64], sizes = [8, 32], strides = [1, 1]} : vector<8x128xf32> to vector<8x32xf32>
    %431 = vector.extract_strided_slice %427 {offsets = [0, 96], sizes = [8, 32], strides = [1, 1]} : vector<8x128xf32> to vector<8x32xf32>
    %432 = arith.mulf %429, %410 : vector<8x32xf32>
    %433 = arith.mulf %428, %430 : vector<8x32xf32>
    %434 = arith.addf %432, %433 : vector<8x32xf32>
    %435 = math.tanh %434 : vector<8x32xf32>
    %436 = arith.mulf %431, %435 : vector<8x32xf32>
    %c28_145 = arith.constant 28 : index
    %c0_146 = arith.constant 0 : index
    %437 = vector.load %arg14[%c28_145, %c0_146] : memref<32x256xf32, #tpu.memory_space<vmem>>, vector<4x128xf32>
    %c0_147 = arith.constant 0 : index
    %c128_148 = arith.constant 128 : index
    %438 = vector.load %arg14[%c0_147, %c128_148] : memref<32x256xf32, #tpu.memory_space<vmem>>, vector<4x128xf32>
    %439 = tpu.concatenate %437, %438 in 0 : vector<4x128xf32>, vector<4x128xf32> -> vector<8x128xf32>
    %cst_149 = arith.constant dense<0.000000e+00> : vector<8x256xf32>
    %440 = tpu.matmul %436, %257, %cst_149 {dimension_numbers = #tpu.dot_dimension_numbers<[1], [0], [0], [1], [0, 0, 1, 1], [], []>} : vector<8x32xf32>, vector<32x256xf32>, vector<8x256xf32> -> vector<8x256xf32>
    %441 = vector.extract_strided_slice %440 {offsets = [0, 0], sizes = [8, 128], strides = [1, 1]} : vector<8x256xf32> to vector<8x128xf32>
    %442 = vector.extract_strided_slice %440 {offsets = [0, 128], sizes = [8, 128], strides = [1, 1]} : vector<8x256xf32> to vector<8x128xf32>
    %443 = arith.select %262, %441, %442 : vector<8x128xi1>, vector<8x128xf32>
    %444 = arith.addf %439, %443 : vector<8x128xf32>
    %445 = math.tanh %444 : vector<8x128xf32>
    %446 = arith.negf %444 : vector<8x128xf32>
    %447 = math.exp %446 : vector<8x128xf32>
    %cst_150 = arith.constant 1.000000e+00 : f32
    %448 = vector.broadcast %cst_150 : f32 to vector<8x128xf32>
    %449 = arith.addf %448, %447 : vector<8x128xf32>
    %450 = arith.divf %448, %449 : vector<8x128xf32>
    %451 = arith.select %268, %445, %450 : vector<8x128xi1>, vector<8x128xf32>
    %452 = vector.extract_strided_slice %451 {offsets = [0, 0], sizes = [8, 32], strides = [1, 1]} : vector<8x128xf32> to vector<8x32xf32>
    %453 = vector.extract_strided_slice %451 {offsets = [0, 32], sizes = [8, 32], strides = [1, 1]} : vector<8x128xf32> to vector<8x32xf32>
    %454 = vector.extract_strided_slice %451 {offsets = [0, 64], sizes = [8, 32], strides = [1, 1]} : vector<8x128xf32> to vector<8x32xf32>
    %455 = arith.mulf %453, %434 : vector<8x32xf32>
    %456 = arith.mulf %452, %454 : vector<8x32xf32>
    %457 = arith.addf %455, %456 : vector<8x32xf32>
    %458 = vector.extract_strided_slice %457 {offsets = [0, 0], sizes = [4, 32], strides = [1, 1]} : vector<8x32xf32> to vector<4x32xf32>
    %459 = vector.extract_strided_slice %457 {offsets = [4, 0], sizes = [4, 32], strides = [1, 1]} : vector<8x32xf32> to vector<4x32xf32>
    %460 = vector.extract_strided_slice %248 {offsets = [0, 0], sizes = [2, 32], strides = [1, 1]} : vector<4x32xf32> to vector<2x32xf32>
    %461 = vector.extract_strided_slice %249 {offsets = [0, 0], sizes = [2, 32], strides = [1, 1]} : vector<4x32xf32> to vector<2x32xf32>
    %462 = vector.extract_strided_slice %458 {offsets = [0, 0], sizes = [2, 32], strides = [1, 1]} : vector<4x32xf32> to vector<2x32xf32>
    %463 = vector.extract_strided_slice %459 {offsets = [0, 0], sizes = [2, 32], strides = [1, 1]} : vector<4x32xf32> to vector<2x32xf32>
    %464 = tpu.concatenate %460, %461, %462, %463 in 1 : vector<2x32xf32>, vector<2x32xf32>, vector<2x32xf32>, vector<2x32xf32> -> vector<2x128xf32>
    %465 = vector.extract_strided_slice %248 {offsets = [2, 0], sizes = [2, 32], strides = [1, 1]} : vector<4x32xf32> to vector<2x32xf32>
    %466 = vector.extract_strided_slice %249 {offsets = [2, 0], sizes = [2, 32], strides = [1, 1]} : vector<4x32xf32> to vector<2x32xf32>
    %467 = vector.extract_strided_slice %458 {offsets = [2, 0], sizes = [2, 32], strides = [1, 1]} : vector<4x32xf32> to vector<2x32xf32>
    %468 = vector.extract_strided_slice %459 {offsets = [2, 0], sizes = [2, 32], strides = [1, 1]} : vector<4x32xf32> to vector<2x32xf32>
    %469 = tpu.concatenate %465, %466, %467, %468 in 1 : vector<2x32xf32>, vector<2x32xf32>, vector<2x32xf32>, vector<2x32xf32> -> vector<2x128xf32>
    %470 = tpu.concatenate %464, %469 in 1 : vector<2x128xf32>, vector<2x128xf32> -> vector<2x256xf32>
    %c0_151 = arith.constant 0 : index
    %c0_152 = arith.constant 0 : index
    %471 = vector.load %arg9[%c0_151, %c0_152] : memref<256x32xf32, #tpu.memory_space<vmem>>, vector<256x32xf32>
    %cst_153 = arith.constant dense<0.000000e+00> : vector<2x32xf32>
    %472 = tpu.matmul %470, %471, %cst_153 {dimension_numbers = #tpu.dot_dimension_numbers<[1], [0], [0], [1], [0, 0, 1, 1], [], []>} : vector<2x256xf32>, vector<256x32xf32>, vector<2x32xf32> -> vector<2x32xf32>
    %c0_154 = arith.constant 0 : index
    %c0_155 = arith.constant 0 : index
    %473 = vector.load %arg10[%c0_154, %c0_155] : memref<1x32xf32, #tpu.memory_space<vmem>>, vector<1x32xf32>
    %474 = vector.broadcast %473 : vector<1x32xf32> to vector<2x32xf32>
    %475 = arith.addf %472, %474 : vector<2x32xf32>
    %cst_156 = arith.constant 0.000000e+00 : f32
    %476 = vector.broadcast %cst_156 : f32 to vector<2x32xf32>
    %477 = arith.maximumf %475, %476 : vector<2x32xf32>
    %c0_157 = arith.constant 0 : index
    %c0_158 = arith.constant 0 : index
    %478 = vector.load %arg11[%c0_157, %c0_158] : memref<32x128xf32, #tpu.memory_space<vmem>>, vector<32x128xf32>
    %cst_159 = arith.constant dense<0.000000e+00> : vector<2x128xf32>
    %479 = tpu.matmul %477, %478, %cst_159 {dimension_numbers = #tpu.dot_dimension_numbers<[1], [0], [0], [1], [0, 0, 1, 1], [], []>} : vector<2x32xf32>, vector<32x128xf32>, vector<2x128xf32> -> vector<2x128xf32>
    %c0_160 = arith.constant 0 : index
    %c0_161 = arith.constant 0 : index
    %480 = vector.load %arg12[%c0_160, %c0_161] : memref<1x128xf32, #tpu.memory_space<vmem>>, vector<1x128xf32>
    %481 = vector.broadcast %480 : vector<1x128xf32> to vector<2x128xf32>
    %482 = arith.addf %479, %481 : vector<2x128xf32>
    %c0_162 = arith.constant 0 : index
    %c0_163 = arith.constant 0 : index
    %483 = vector.load %arg13[%c0_162, %c0_163] : memref<2x128xf32, #tpu.memory_space<vmem>>, vector<2x128xf32>
    tpu.vector_store %arg13[%c0_162, %c0_163], %482 {strides = array<i32>} : memref<2x128xf32, #tpu.memory_space<vmem>>, vector<2x128xf32>,
    return
  }
}

</mosaic_0001>

<bundles_post_ra>
// kernel: model_forward.1
= control target key start
LH: loop header
LB: loop body
LE: loop exit
PB: predicated region body
PF: predicated region fallthrough
CT: control target
= control target key end

     0   :  { %vm60_vm0 = vcmask 261120   ;;  %s3669_s0 = inlined_call_operand.vmem [shape: f32[32,32], index: 0, kind: input, shape index: {}]   ;;  %s3670_s1 = inlined_call_operand.vmem [shape: f32[32,32], index: 1, kind: input, shape index: {}]   ;;  %s3671_s2 = inlined_call_operand.vmem [shape: f32[1,32], index: 2, kind: input, shape index: {}]   ;;  %s3672_s3 = inlined_call_operand.vmem [shape: f32[32,256], index: 3, kind: input, shape index: {}]   ;;  %s3673_s4 = inlined_call_operand.vmem [shape: f32[32,256], index: 4, kind: input, shape index: {}]   ;;  %s3674_s5 = inlined_call_operand.vmem [shape: f32[1,256], index: 5, kind: input, shape index: {}]   ;;  %s3675_s6 = inlined_call_operand.vmem [shape: f32[64,256], index: 6, kind: input, shape index: {}]   ;;  %s3676_s7 = inlined_call_operand.vmem [shape: f32[32,256], index: 7, kind: input, shape index: {}]   ;;  %s3677_s8 = inlined_call_operand.vmem [shape: f32[1,256], index: 8, kind: input, shape index: {}]   ;;  %s3678_s9 = inlined_call_operand.vmem [shape: f32[256,32], index: 9, kind: input, shape index: {}]   ;;  %s3679_s10 = inlined_call_operand.vmem [shape: f32[1,32], index: 10, kind: input, shape index: {}]   ;;  %s3680_s11 = inlined_call_operand.vmem [shape: f32[32,128], index: 11, kind: input, shape index: {}]   ;;  %s3681_s12 = inlined_call_operand.vmem [shape: f32[1,128], index: 12, kind: input, shape index: {}]   ;;  %s3682_s13 = inlined_call_operand.hbm [shape: f32[2,128], index: 13, kind: output, shape index: {}]  }
   0x1   :  { %v49_v0 = vld [vmem:[%s3670_s1] sm:$0xff]  ;;  %v50_v1 = vld [vmem:[%s3670_s1 + $0x8] sm:$0xff]  ;;  %v51_v2 = vld [vmem:[%s3670_s1 + $0x10] sm:$0xff] }
   0x2   :  { %v2587_v3 = vpack.c.bf16 %v50_v1, %v49_v0  ;;  %v52_v4 = vld [vmem:[%s3670_s1 + $0x18] sm:$0xff]  ;;  %v45_v5 = vld [vmem:[%s3669_s0] sm:$0xff]  ;;  %v159_v7 = vld [vmem:[%s3672_s3 + $0x8] sm:$0xff] }
   0x3   :  { %v2591_v6 = vpack.c.bf16 %v52_v4, %v51_v2  ;;  %2570 = vmatprep.mubr.msk.f32.mxu1 %vm60_vm0, %v45_v5  ;;  %v161_v8 = vld [vmem:[%s3672_s3 + $0x18] sm:$0xff] }
   0x4   :  { %2588 = vmatprep.subr.bf16.mxu1 %v2587_v3 }
   0x5   :  { %2590 = vmatpush3.bf16.msra.mxu1 %v2587_v3 }
   0x6   :  { %18 = vsyncpa [#allocation5], 0  ;;  %2592 = vmatprep.subr.bf16.mxu1 %v2591_v6  ;;  %v2595_v9 = vpack.c.bf16 %v161_v8, %v159_v7  ;;  %v158_v10 = vld [vmem:[%s3672_s3] sm:$0xff]  ;;  %v160_v11 = vld [vmem:[%s3672_s3 + $0x10] sm:$0xff]  ;;  %v2942_v22 = vmov 0.0   ;;  %v168_v44 = vlaneseq  ;;  %vm305_vm2 = vcmask 1043456  }
   0x7   :  { %v163_v12 = vld [vmem:[%s3672_s3 + $0x28] sm:$0xff]  ;;  %v165_v13 = vld [vmem:[%s3672_s3 + $0x38] sm:$0xff]  ;;  %v2597_v15 = vpack.c.bf16 %v160_v11, %v158_v10  ;;  %v47_v16 = vld [vmem:[%s3669_s0 + $0x10] sm:$0xff]  ;;  %374 = vmatprep.mubr.f32.mxu0 %v2942_v22  ;;  %s2944_s20 = smov 32   ;;  %vm412_vm6 = vcmask 257024   ;;  %vm417_vm7 = vcmask 523524  }
   0x8   :  { %v46_v14 = vld [vmem:[%s3669_s0 + $0x8] sm:$0xff]  ;;  %v2599_v17 = vpack.c.bf16 %v165_v13, %v163_v12  ;;  %v48_v18 = vld [vmem:[%s3669_s0 + $0x18] sm:$0xff]  ;;  %v162_v19 = vld [vmem:[%s3672_s3 + $0x20] sm:$0xff]  ;;  %v3132_v45 = vshrl.u32 %v168_v44, 7  ;;  %v299_v13 = vand.u32 127, %v168_v44  ;;  %vm1259_vm8 = vcmask 523264  }
   0x9   :  { %2594 = vmatpush3.bf16.msra.mxu1 %v2591_v6  ;;  %v164_v20 = vld [vmem:[%s3672_s3 + $0x30] sm:$0xff]  ;;  %v288_v23 = vld [vmem:[%s3673_s4 + $0x8] sm:$0xff]  ;;  %v290_v24 = vld [vmem:[%s3673_s4 + $0x18] sm:$0xff]  ;;  %vm2254_vm9 = vcmask 785408   ;;  %vm2947_vm10 = vmmov 0  }
   0xa   :  { %2596 = vmatprep.subr.bf16.mxu1 %v2595_v9  ;;  %v2601_v21 = vpack.c.bf16 %v164_v20, %v162_v19  ;;  %v3079_v25 = vpack.c.bf16 %v290_v24, %v288_v23  ;;  %v287_v26 = vld [vmem:[%s3673_s4] sm:$0xff]  ;;  %v289_v27 = vld [vmem:[%s3673_s4 + $0x10] sm:$0xff]  ;;  %v292_v29 = vld [vmem:[%s3673_s4 + $0x28] sm:$0xff]  ;;  %vm297_vm1 = vcmp.lt.s32.totalorder %v3132_v45, 4  ;;  %v170_v49 = vsub.s32 0, %v3132_v45 }
   0xb   :  { %v3087_v28 = vpack.c.bf16 %v289_v27, %v287_v26  ;;  %v294_v30 = vld [vmem:[%s3673_s4 + $0x38] sm:$0xff]  ;;  %v291_v31 = vld [vmem:[%s3673_s4 + $0x20] sm:$0xff]  ;;  %v293_v33 = vld [vmem:[%s3673_s4 + $0x30] sm:$0xff]  ;;  %v174_v51 = vsub.s32 1, %v3132_v45  ;;  %vm300_vm3 = vcmp.ge.s32.totalorder %v299_v13, 64  ;;  %vm301_vm4 = vcmp.lt.s32.totalorder %v299_v13, 96 }
   0xc   :  { %2571 = vmatmul.mubr.msk.f32.vlgmr.msra.gmra.mrb[0].mxu1 %vm60_vm0, %v46_v14  ;;  %2604 = vmatprep.subr.bf16.mxu0 %v3079_v25  ;;  %v3099_v32 = vpack.c.bf16 %v294_v30, %v292_v29  ;;  %v3106_v34 = vpack.c.bf16 %v293_v33, %v291_v31  ;;  %v2468_v35 = vld [vmem:[%s3671_s2] ss:$0 sm:$0xff]  ;;  %vm3147_vm5 = vmand %vm300_vm3, %vm301_vm4 }
   0xd   :  { %2573 = vmatprep.mubr.msk.f32.mxu1 %vm60_vm0, %v47_v16  ;;  %2598 = vmatpush1.bf16.msra.mxu1 %v2597_v15  ;;  %v166_v50 = vld [vmem:[%s3674_s5] sm:$0x3]  ;;  %s2943_s5 = smov 64  }
   0xe   :  { %2600 = vmatprep.subr.bf16.mxu1 %v2599_v17  ;;  %2606 = vmatpush1.bf16.msra.mxu0 %v3087_v28  ;;  %v171_v52 = vrot.slane %v166_v50, %v170_v49  ;;  %v175_v53 = vrot.slane %v166_v50, %v174_v51  ;;  %v2275_v45 = vld [vmem:[%s3678_s9 + $0x80] sm:$0xff] }
   0xf   :  { %2608 = vmatprep.subr.bf16.mxu0 %v3099_v32  ;;  %v2259_v14 = vld [vmem:[%s3678_s9] sm:$0xff] }
  0x10   :  { %2574 = vmatmul.mubr.msk.f32.gmra.mrb[2].mxu1 %vm60_vm0, %v48_v18 }
  0x11   :  { %2602 = vmatpush1.bf16.msra.mxu1 %v2601_v21  ;;  %254 = vmatprep.mubr.f32.mxu1 %v2942_v22 }
  0x12   :  { %2620 = vmatprep.subr.bf16.mxu1 %v3079_v25  ;;  %2610 = vmatpush1.bf16.msra.mxu0 %v3106_v34 }
  0x13   :  { %2612 = vmatprep.subr.bf16.mxu0 %v3079_v25 }
  0x15   :  { %375 = vmatmul.mubr.f32.vlgmr.msra.gmra.mrb[0].mxu0 %v2942_v22 }
  0x16   :  { %2614 = vmatpush1.bf16.msra.mxu0 %v3087_v28  ;;  %494 = vmatprep.mubr.f32.mxu0 %v2942_v22 }
  0x17   :  { %2616 = vmatprep.subr.bf16.mxu0 %v3099_v32 }
  0x1a   :  { %2618 = vmatpush1.bf16.msra.mxu0 %v3106_v34 }
  0x1b   :  { %2628 = vmatprep.subr.bf16.mxu0 %v3079_v25 }
  0xdf   :  { %v2572_v36 = vpop.f32.mrb[0].mxu1 }
  0xe0   :  { %v139_v37 = vpop.f32.mrb[1].mxu1  ;;  %v145_v41 = vadd.f32 %v2572_v36, %v2468_v35 }
  0xe1   :  { %v140_v38 = vadd.f32 %v2468_v35, %v139_v37 }
  0xe3   :  { %2473 = vmatmul.mubr.msk.f32.vlgmr.msra.gmra.mrb[4].mxu1 %vm60_vm0, %v140_v38  ;;  %v2575_v39 = vpop.f32.mrb[2].mxu1 }
  0xe4   :  { %260 = vmatprep.mubr.f32.mxu1 %v2942_v22  ;;  %v149_v40 = vpop.f32.mrb[3].mxu1  ;;  %2622 = vmatpush1.bf16.msra.mxu1 %v3087_v28  ;;  %v155_v43 = vadd.f32 %v2575_v39, %v2468_v35 }
  0xe5   :  { %2624 = vmatprep.subr.bf16.mxu1 %v3099_v32  ;;  %v150_v42 = vadd.f32 %v2468_v35, %v149_v40 }
  0xe7   :  { %2474 = vmatmul.mubr.msk.f32.gmra.mrb[6].mxu1 %vm60_vm0, %v145_v41 }
  0xe8   :  { %266 = vmatprep.mubr.f32.mxu1 %v2942_v22  ;;  %2626 = vmatpush1.bf16.msra.mxu1 %v3106_v34  ;;  %v376_v46 = vpop.f32.mrb[0].mxu0 }
  0xe9   :  { %2636 = vmatprep.subr.bf16.mxu1 %v3079_v25  ;;  %v378_v47 = vpop.f32.mrb[1].mxu0 }
  0xea   :  { %v381_v48 = vsel %vm297_vm1, %v376_v46, %v378_v47 }
  0xeb   :  { %2475 = vmatmul.mubr.msk.f32.gmra.mrb[8].mxu1 %vm60_vm0, %v150_v42 }
  0xec   :  { %272 = vmatprep.mubr.f32.mxu1 %v2942_v22 }
  0xef   :  { %2476 = vmatmul.mubr.msk.f32.gmra.mrb[10].mxu1 %vm60_vm0, %v155_v43 }
  0xf0   :  { %606 = vmatprep.mubr.f32.mxu1 %v2942_v22 }
 0x1b6   :  { %v256_v54 = vpop.f32.mrb[4].mxu1 }
 0x1b7   :  { %v257_v55 = vadd.f32 %v256_v54, %v171_v52  ;;  %v258_v56 = vpop.f32.mrb[5].mxu1 }
 0x1b8   :  { %v259_v57 = vadd.f32 %v258_v56, %v175_v53 }
 0x1b9   :  { %279 = vst [vmem:[#allocation2] sm:$0xff] %v257_v55 }
 0x1ba   :  { %280 = vst [vmem:[#allocation2 + $0x8] sm:$0xff] %v259_v57  ;;  %v262_v58 = vpop.f32.mrb[6].mxu1 }
 0x1bb   :  { %v263_v59 = vadd.f32 %v262_v58, %v171_v52  ;;  %v264_v60 = vpop.f32.mrb[7].mxu1 }
 0x1bc   :  { %v265_v61 = vadd.f32 %v264_v60, %v175_v53 }
 0x1bd   :  { %281 = vst [vmem:[#allocation2 + $0x10] sm:$0xff] %v263_v59 }
 0x1be   :  { %282 = vst [vmem:[#allocation2 + $0x18] sm:$0xff] %v265_v61  ;;  %v268_v62 = vpop.f32.mrb[8].mxu1 }
 0x1bf   :  { %v269_v63 = vadd.f32 %v268_v62, %v171_v52  ;;  %v270_v0 = vpop.f32.mrb[9].mxu1 }
 0x1c0   :  { %v271_v1 = vadd.f32 %v270_v0, %v175_v53  ;;  %v303_v6 = vld [vmem:[#allocation2] sm:$0xf]  ;;  %v419_v31 = vld [vmem:[#allocation2] sm:$0xf0] }
 0x1c1   :  { %283 = vst [vmem:[#allocation2 + $0x20] sm:$0xff] %v269_v63  ;;  %v422_v36 = vrot.slane %v419_v31, 4 }
 0x1c2   :  { %284 = vst [vmem:[#allocation2 + $0x28] sm:$0xff] %v271_v1  ;;  %v274_v2 = vpop.f32.mrb[10].mxu1 }
 0x1c3   :  { %v275_v3 = vadd.f32 %v274_v2, %v171_v52  ;;  %v276_v4 = vpop.f32.mrb[11].mxu1 }
 0x1c4   :  { %v277_v5 = vadd.f32 %v276_v4, %v175_v53  ;;  %v537_v61 = vld [vmem:[#allocation2 + $0x10] sm:$0xf] }
 0x1c5   :  { %285 = vst [vmem:[#allocation2 + $0x30] sm:$0xff] %v275_v3 }
 0x1c6   :  { %286 = vst [vmem:[#allocation2 + $0x38] sm:$0xff] %v277_v5 }
 0x1c9   :  { %v538_v59 = vld [vmem:[#allocation2 + $0x28] sm:$0xf0] }
 0x1ca   :  { %v539_v63 = vsel %vm305_vm2, %v537_v61, %v538_v59 }
 0x1cd   :  { %v304_v7 = vld [vmem:[#allocation2 + $0x38] sm:$0xf0]  ;;  %v420_v30 = vld [vmem:[#allocation2 + $0x38] sm:$0xf] }
 0x1ce   :  { %v306_v8 = vsel %vm305_vm2, %v303_v6, %v304_v7  ;;  %v425_v33 = vrot.slane %v420_v30, 4 }
 0x1cf   :  { %v382_v9 = vadd.f32 %v381_v48, %v306_v8 }
 0x1d0   :  { %v427_v38 = vsel %vm305_vm2, %v422_v36, %v425_v33 }
 0x1d1   :  { %v2477_v10 = vmul.f32 -1.442695, %v382_v9 }
 0x1d3   :  { %2792 = vpow2.f32 %v2477_v10 }
 0x1d4   :  { %2794 = vtanh.f32 %v382_v9 }
 0x1dd   :  { %v2793_v11 = vpop.eup %2792 }
 0x1de   :  { %v387_v12 = vadd.f32 1.0, %v2793_v11  ;;  %v2795_v15 = vpop.eup %2794 }
 0x1e0   :  { %2796 = vrcp.f32 %v387_v12 }
 0x1ea   :  { %v2797_v16 = vpop.eup %2796 }
 0x1eb   :  { %v390_v17 = vsel %vm3147_vm5, %v2795_v15, %v2797_v16 }
 0x1ec   :  { %393 = vrot.lane.b32.xlu0 %v390_v17, %s2943_s5  ;;  %v391_v20 = vmul.f32 0.0, %v390_v17 }
 0x25e   :  { %v394_v18 = vpop.permute.xlu0 %393 }
 0x25f   :  { %v396_v19 = vmul.f32 %v394_v18, %v390_v17  ;;  %v650_v18 = vld [vmem:[#allocation2 + $0x28] sm:$0xf] }
 0x261   :  { %398 = vrot.lane.b32.xlu0 %v396_v19, %s2944_s20  ;;  %v649_v19 = vld [vmem:[#allocation2 + $0x10] sm:$0xf0] }
 0x2d3   :  { %v399_v21 = vpop.permute.xlu0 %398 }
 0x2d4   :  { %v401_v23 = vadd.f32 %v399_v21, %v391_v20  ;;  %v655_v20 = vrot.slane %v650_v18, 4 }
 0x2d6   :  { %2798 = vtanh.f32 %v401_v23 }
 0x2e0   :  { %v2799_v24 = vpop.eup %2798 }
 0x2e1   :  { %404 = vrot.lane.b32.xlu1 %v2799_v24, %s2943_s5 }
 0x353   :  { %v405_v26 = vpop.permute.xlu1 %404 }
 0x354   :  { %v3156_v27 = vmul.f32 %v405_v26, %v390_v17 }
 0x356   :  { %409 = vrot.lane.b32.xlu1 %v3156_v27, %s2944_s20 }
 0x3c8   :  { %v410_v29 = vpop.permute.xlu1 %409 }
 0x3c9   :  { %413 = vst.msk [vmem:[#allocation3] sm:$0xf] %vm412_vm6, %v410_v29  ;;  %2478 = vmatmul.mubr.msk.f32.vlgmr.msra.gmra.mrb[2].mxu0 %vm60_vm0, %v410_v29 }
 0x3ca   :  { %2630 = vmatpush1.bf16.msra.mxu0 %v3087_v28  ;;  %724 = vmatprep.mubr.f32.mxu0 %v2942_v22 }
 0x3cb   :  { %2632 = vmatprep.subr.bf16.mxu0 %v3099_v32 }
 0x3ce   :  { %2634 = vmatpush1.bf16.msra.mxu0 %v3106_v34 }
 0x3cf   :  { %2644 = vmatprep.subr.bf16.mxu0 %v3079_v25 }
 0x49c   :  { %v496_v35 = vpop.f32.mrb[2].mxu0 }
 0x49d   :  { %v498_v37 = vpop.f32.mrb[3].mxu0 }
 0x49e   :  { %v501_v39 = vsel %vm297_vm1, %v496_v35, %v498_v37 }
 0x49f   :  { %v502_v40 = vadd.f32 %v501_v39, %v427_v38 }
 0x4a1   :  { %v2479_v41 = vmul.f32 -1.442695, %v502_v40 }
 0x4a3   :  { %2800 = vpow2.f32 %v2479_v41 }
 0x4a4   :  { %2802 = vtanh.f32 %v502_v40 }
 0x4ad   :  { %v2801_v42 = vpop.eup %2800 }
 0x4ae   :  { %v507_v43 = vadd.f32 1.0, %v2801_v42  ;;  %v2803_v44 = vpop.eup %2802 }
 0x4b0   :  { %2804 = vrcp.f32 %v507_v43 }
 0x4ba   :  { %v2805_v46 = vpop.eup %2804 }
 0x4bb   :  { %v510_v47 = vsel %vm3147_vm5, %v2803_v44, %v2805_v46 }
 0x4bc   :  { %513 = vrot.lane.b32.xlu0 %v510_v47, %s2943_s5  ;;  %v511_v52 = vmul.f32 %v510_v47, %v401_v23  ;;  %v652_v23 = vrot.slane %v649_v19, 4 }
 0x4be   :  { %v657_v26 = vsel %vm305_vm2, %v652_v23, %v655_v20 }
 0x52e   :  { %v514_v48 = vpop.permute.xlu0 %513 }
 0x52f   :  { %v516_v50 = vmul.f32 %v514_v48, %v510_v47  ;;  %v767_v48 = vld [vmem:[#allocation2 + $0x20] sm:$0xf] }
 0x531   :  { %518 = vrot.lane.b32.xlu1 %v516_v50, %s2944_s20 }
 0x5a3   :  { %v519_v53 = vpop.permute.xlu1 %518 }
 0x5a4   :  { %v521_v54 = vadd.f32 %v519_v53, %v511_v52  ;;  %v768_v52 = vld [vmem:[#allocation2 + $0x18] sm:$0xf0] }
 0x5a6   :  { %2806 = vtanh.f32 %v521_v54 }
 0x5b0   :  { %v2807_v55 = vpop.eup %2806 }
 0x5b1   :  { %524 = vrot.lane.b32.xlu0 %v2807_v55, %s2943_s5 }
 0x623   :  { %v525_v56 = vpop.permute.xlu0 %524 }
 0x624   :  { %v3175_v57 = vmul.f32 %v525_v56, %v510_v47 }
 0x626   :  { %529 = vrot.lane.b32.xlu1 %v3175_v57, %s2944_s20 }
 0x698   :  { %v530_v58 = vpop.permute.xlu1 %529 }
 0x699   :  { %532 = vst.msk [vmem:[#allocation3 + $0x4] sm:$0xf] %vm412_vm6, %v530_v58  ;;  %2480 = vmatmul.mubr.msk.f32.vlgmr.msra.gmra.mrb[12].mxu1 %vm60_vm0, %v530_v58 }
 0x69a   :  { %2638 = vmatpush1.bf16.msra.mxu1 %v3087_v28  ;;  %836 = vmatprep.mubr.f32.mxu1 %v2942_v22 }
 0x69b   :  { %2640 = vmatprep.subr.bf16.mxu1 %v3099_v32 }
 0x69e   :  { %2642 = vmatpush1.bf16.msra.mxu1 %v3106_v34 }
 0x69f   :  { %2652 = vmatprep.subr.bf16.mxu1 %v3079_v25 }
 0x76c   :  { %v608_v60 = vpop.f32.mrb[12].mxu1 }
 0x76d   :  { %v610_v62 = vpop.f32.mrb[13].mxu1 }
 0x76e   :  { %v613_v0 = vsel %vm297_vm1, %v608_v60, %v610_v62 }
 0x76f   :  { %v614_v1 = vadd.f32 %v613_v0, %v539_v63 }
 0x771   :  { %v2481_v2 = vmul.f32 -1.442695, %v614_v1 }
 0x773   :  { %2808 = vpow2.f32 %v2481_v2 }
 0x774   :  { %2810 = vtanh.f32 %v614_v1 }
 0x77d   :  { %v2809_v3 = vpop.eup %2808 }
 0x77e   :  { %v619_v4 = vadd.f32 1.0, %v2809_v3  ;;  %v2811_v5 = vpop.eup %2810 }
 0x780   :  { %2812 = vrcp.f32 %v619_v4 }
 0x78a   :  { %v2813_v6 = vpop.eup %2812 }
 0x78b   :  { %v622_v7 = vsel %vm3147_vm5, %v2811_v5, %v2813_v6 }
 0x78c   :  { %625 = vrot.lane.b32.xlu0 %v622_v7, %s2943_s5  ;;  %v623_v10 = vmul.f32 %v622_v7, %v521_v54  ;;  %v769_v54 = vsel %vm305_vm2, %v767_v48, %v768_v52 }
 0x7fe   :  { %v626_v8 = vpop.permute.xlu0 %625 }
 0x7ff   :  { %v628_v9 = vmul.f32 %v626_v8, %v622_v7 }
 0x801   :  { %630 = vrot.lane.b32.xlu1 %v628_v9, %s2944_s20  ;;  %v879_v9 = vld [vmem:[#allocation2 + $0x20] sm:$0xf0] }
 0x873   :  { %v631_v11 = vpop.permute.xlu1 %630 }
 0x874   :  { %v633_v12 = vadd.f32 %v631_v11, %v623_v10  ;;  %v880_v10 = vld [vmem:[#allocation2 + $0x18] sm:$0xf]  ;;  %v882_v11 = vrot.slane %v879_v9, 4 }
 0x876   :  { %2814 = vtanh.f32 %v633_v12 }
 0x880   :  { %v2815_v13 = vpop.eup %2814 }
 0x881   :  { %636 = vrot.lane.b32.xlu0 %v2815_v13, %s2943_s5  ;;  %v885_v13 = vrot.slane %v880_v10, 4 }
 0x8f3   :  { %v637_v15 = vpop.permute.xlu0 %636 }
 0x8f4   :  { %v3194_v16 = vmul.f32 %v637_v15, %v622_v7 }
 0x8f6   :  { %641 = vrot.lane.b32.xlu1 %v3194_v16, %s2944_s20 }
 0x968   :  { %v642_v17 = vpop.permute.xlu1 %641 }
 0x969   :  { %644 = vst.msk [vmem:[#allocation3 + $0x8] sm:$0xf] %vm412_vm6, %v642_v17  ;;  %2482 = vmatmul.mubr.msk.f32.vlgmr.msra.gmra.mrb[4].mxu0 %vm60_vm0, %v642_v17  ;;  %v887_v17 = vsel %vm305_vm2, %v882_v11, %v885_v13 }
 0x96a   :  { %2646 = vmatpush1.bf16.msra.mxu0 %v3087_v28  ;;  %954 = vmatprep.mubr.f32.mxu0 %v2942_v22 }
 0x96b   :  { %2648 = vmatprep.subr.bf16.mxu0 %v3099_v32 }
 0x96e   :  { %2650 = vmatpush1.bf16.msra.mxu0 %v3106_v34 }
 0x96f   :  { %2660 = vmatprep.subr.bf16.mxu0 %v3079_v25 }
 0xa3c   :  { %v726_v21 = vpop.f32.mrb[4].mxu0 }
 0xa3d   :  { %v728_v24 = vpop.f32.mrb[5].mxu0 }
 0xa3e   :  { %v731_v29 = vsel %vm297_vm1, %v726_v21, %v728_v24 }
 0xa3f   :  { %v732_v30 = vadd.f32 %v731_v29, %v657_v26 }
 0xa41   :  { %v2483_v31 = vmul.f32 -1.442695, %v732_v30 }
 0xa43   :  { %2816 = vpow2.f32 %v2483_v31 }
 0xa44   :  { %2818 = vtanh.f32 %v732_v30 }
 0xa4d   :  { %v2817_v33 = vpop.eup %2816 }
 0xa4e   :  { %v737_v35 = vadd.f32 1.0, %v2817_v33  ;;  %v2819_v36 = vpop.eup %2818 }
 0xa50   :  { %2820 = vrcp.f32 %v737_v35 }
 0xa5a   :  { %v2821_v25 = vpop.eup %2820 }
 0xa5b   :  { %v740_v37 = vsel %vm3147_vm5, %v2819_v36, %v2821_v25 }
 0xa5c   :  { %743 = vrot.lane.b32.xlu0 %v740_v37, %s2943_s5  ;;  %v741_v40 = vmul.f32 %v740_v37, %v633_v12 }
 0xace   :  { %v744_v38 = vpop.permute.xlu0 %743 }
 0xacf   :  { %v746_v39 = vmul.f32 %v744_v38, %v740_v37 }
 0xad1   :  { %748 = vrot.lane.b32.xlu1 %v746_v39, %s2944_s20  ;;  %v998_v39 = vld [vmem:[#allocation2 + $0x8] sm:$0xf0] }
 0xb43   :  { %v749_v41 = vpop.permute.xlu1 %748 }
 0xb44   :  { %v751_v42 = vadd.f32 %v749_v41, %v741_v40 }
 0xb46   :  { %2822 = vtanh.f32 %v751_v42 }
 0xb50   :  { %v2823_v43 = vpop.eup %2822 }
 0xb51   :  { %754 = vrot.lane.b32.xlu0 %v2823_v43, %s2943_s5 }
 0xbc3   :  { %v755_v44 = vpop.permute.xlu0 %754 }
 0xbc4   :  { %v3213_v46 = vmul.f32 %v755_v44, %v740_v37  ;;  %v997_v37 = vld [vmem:[#allocation2 + $0x30] sm:$0xf] }
 0xbc5   :  { %v999_v41 = vsel %vm305_vm2, %v997_v37, %v998_v39  ;;  %v1237_v39 = vld [vmem:[%s3675_s6 + $0x30] sm:$0xff] }
 0xbc6   :  { %759 = vrot.lane.b32.xlu1 %v3213_v46, %s2944_s20 }
 0xc38   :  { %v760_v47 = vpop.permute.xlu1 %759 }
 0xc39   :  { %762 = vst.msk [vmem:[#allocation3 + $0xc] sm:$0xf] %vm412_vm6, %v760_v47  ;;  %2484 = vmatmul.mubr.msk.f32.vlgmr.msra.gmra.mrb[14].mxu1 %vm60_vm0, %v760_v47 }
 0xc3a   :  { %2654 = vmatpush1.bf16.msra.mxu1 %v3087_v28  ;;  %1066 = vmatprep.mubr.f32.mxu1 %v2942_v22 }
 0xc3b   :  { %2656 = vmatprep.subr.bf16.mxu1 %v3099_v32 }
 0xc3e   :  { %2658 = vmatpush1.bf16.msra.mxu1 %v3106_v34 }
 0xd0c   :  { %v838_v50 = vpop.f32.mrb[14].mxu1 }
 0xd0d   :  { %v840_v53 = vpop.f32.mrb[15].mxu1 }
 0xd0e   :  { %v843_v55 = vsel %vm297_vm1, %v838_v50, %v840_v53 }
 0xd0f   :  { %v844_v56 = vadd.f32 %v843_v55, %v769_v54 }
 0xd11   :  { %v2485_v58 = vmul.f32 -1.442695, %v844_v56 }
 0xd13   :  { %2824 = vpow2.f32 %v2485_v58 }
 0xd14   :  { %2826 = vtanh.f32 %v844_v56 }
 0xd1d   :  { %v2825_v59 = vpop.eup %2824 }
 0xd1e   :  { %v849_v60 = vadd.f32 1.0, %v2825_v59  ;;  %v2827_v61 = vpop.eup %2826 }
 0xd20   :  { %2828 = vrcp.f32 %v849_v60 }
 0xd2a   :  { %v2829_v62 = vpop.eup %2828 }
 0xd2b   :  { %v852_v63 = vsel %vm3147_vm5, %v2827_v61, %v2829_v62 }
 0xd2c   :  { %855 = vrot.lane.b32.xlu0 %v852_v63, %s2943_s5  ;;  %v853_v2 = vmul.f32 %v852_v63, %v751_v42 }
 0xd9e   :  { %v856_v0 = vpop.permute.xlu0 %855 }
 0xd9f   :  { %v858_v1 = vmul.f32 %v856_v0, %v852_v63  ;;  %v1109_v0 = vld [vmem:[#allocation2 + $0x30] sm:$0xf0] }
 0xda1   :  { %860 = vrot.lane.b32.xlu1 %v858_v1, %s2944_s20  ;;  %v1110_v1 = vld [vmem:[#allocation2 + $0x8] sm:$0xf] }
 0xe13   :  { %v861_v3 = vpop.permute.xlu1 %860 }
 0xe14   :  { %v863_v4 = vadd.f32 %v861_v3, %v853_v2  ;;  %v1112_v2 = vrot.slane %v1109_v0, 4  ;;  %v1369_v0 = vld [vmem:[%s3676_s7] sm:$0xff] }
 0xe16   :  { %2830 = vtanh.f32 %v863_v4 }
 0xe20   :  { %v2831_v5 = vpop.eup %2830 }
 0xe21   :  { %866 = vrot.lane.b32.xlu0 %v2831_v5, %s2943_s5 }
 0xe93   :  { %v867_v6 = vpop.permute.xlu0 %866 }
 0xe94   :  { %v3231_v7 = vmul.f32 %v867_v6, %v852_v63 }
 0xe96   :  { %871 = vrot.lane.b32.xlu1 %v3231_v7, %s2944_s20 }
 0xf08   :  { %v3235_v8 = vpop.permute.xlu1 %871 }
 0xf09   :  { %2486 = vmatmul.mubr.msk.f32.vlgmr.msra.gmra.mrb[6].mxu0 %vm60_vm0, %v3235_v8 }
 0xf0a   :  { %2662 = vmatpush1.bf16.msra.mxu0 %v3087_v28  ;;  %1184 = vmatprep.mubr.f32.mxu0 %v2942_v22 }
 0xf0b   :  { %2664 = vmatprep.subr.bf16.mxu0 %v3099_v32 }
 0xf0e   :  { %2666 = vmatpush1.bf16.msra.mxu0 %v3106_v34 }
 0xfdc   :  { %v956_v12 = vpop.f32.mrb[6].mxu0 }
 0xfdd   :  { %v958_v15 = vpop.f32.mrb[7].mxu0 }
 0xfde   :  { %v961_v18 = vsel %vm297_vm1, %v956_v12, %v958_v15 }
 0xfdf   :  { %v962_v19 = vadd.f32 %v961_v18, %v887_v17 }
 0xfe1   :  { %v2487_v20 = vmul.f32 -1.442695, %v962_v19 }
 0xfe3   :  { %2832 = vpow2.f32 %v2487_v20 }
 0xfe4   :  { %2834 = vtanh.f32 %v962_v19 }
 0xfed   :  { %v2833_v28 = vpop.eup %2832 }
 0xfee   :  { %v967_v21 = vadd.f32 1.0, %v2833_v28  ;;  %v2835_v32 = vpop.eup %2834 }
 0xff0   :  { %2836 = vrcp.f32 %v967_v21 }
 0xffa   :  { %v2837_v34 = vpop.eup %2836 }
 0xffb   :  { %v970_v23 = vsel %vm3147_vm5, %v2835_v32, %v2837_v34 }
 0xffc   :  { %973 = vrot.lane.b32.xlu0 %v970_v23, %s2943_s5  ;;  %v971_v29 = vmul.f32 %v970_v23, %v863_v4  ;;  %v1115_v4 = vrot.slane %v1110_v1, 4  ;;  %v1371_v1 = vld [vmem:[%s3676_s7 + $0x10] sm:$0xff] }
 0xffe   :  { %v1117_v6 = vsel %vm305_vm2, %v1112_v2, %v1115_v4  ;;  %v1374_v2 = vld [vmem:[%s3676_s7 + $0x28] sm:$0xff]  ;;  %v1373_v4 = vld [vmem:[%s3676_s7 + $0x20] sm:$0xff] }
0x106e   :  { %v974_v24 = vpop.permute.xlu0 %973 }
0x106f   :  { %v976_v26 = vmul.f32 %v974_v24, %v970_v23 }
0x1071   :  { %978 = vrot.lane.b32.xlu1 %v976_v26, %s2944_s20  ;;  %v1231_v26 = vld [vmem:[%s3675_s6] sm:$0xff] }
0x10e3   :  { %v979_v30 = vpop.permute.xlu1 %978 }
0x10e4   :  { %v981_v31 = vadd.f32 %v979_v30, %v971_v29 }
0x10e6   :  { %2838 = vtanh.f32 %v981_v31 }
0x10f0   :  { %v2839_v33 = vpop.eup %2838 }
0x10f1   :  { %984 = vrot.lane.b32.xlu0 %v2839_v33, %s2943_s5  ;;  %v1236_v33 = vld [vmem:[%s3675_s6 + $0x28] sm:$0xff] }
0x1163   :  { %v985_v35 = vpop.permute.xlu0 %984 }
0x1164   :  { %v3251_v36 = vmul.f32 %v985_v35, %v970_v23  ;;  %v1238_v35 = vld [vmem:[%s3675_s6 + $0x38] sm:$0xff] }
0x1165   :  { %v2671_v37 = vpack.c.bf16 %v1238_v35, %v1236_v33 }
0x1166   :  { %989 = vrot.lane.b32.xlu1 %v3251_v36, %s2944_s20 }
0x11d8   :  { %v3255_v25 = vpop.permute.xlu1 %989 }
0x11d9   :  { %2488 = vmatmul.mubr.msk.f32.vlgmr.msra.gmra.mrb[16].mxu1 %vm60_vm0, %v3255_v25 }
0x11da   :  { %1336 = vmatprep.mubr.f32.mxu1 %v2942_v22 }
0x12ac   :  { %v1068_v38 = vpop.f32.mrb[16].mxu1 }
0x12ad   :  { %v1070_v40 = vpop.f32.mrb[17].mxu1 }
0x12ae   :  { %v1073_v42 = vsel %vm297_vm1, %v1068_v38, %v1070_v40  ;;  %v1235_v38 = vld [vmem:[%s3675_s6 + $0x20] sm:$0xff] }
0x12af   :  { %v1074_v43 = vadd.f32 %v1073_v42, %v999_v41  ;;  %v2673_v40 = vpack.c.bf16 %v1237_v39, %v1235_v38  ;;  %v1240_v41 = vld [vmem:[%s3675_s6 + $0x48] sm:$0xff]  ;;  %v1242_v42 = vld [vmem:[%s3675_s6 + $0x58] sm:$0xff] }
0x12b1   :  { %v2489_v44 = vmul.f32 -1.442695, %v1074_v43 }
0x12b3   :  { %2840 = vpow2.f32 %v2489_v44  ;;  %v1239_v44 = vld [vmem:[%s3675_s6 + $0x40] sm:$0xff] }
0x12b4   :  { %2842 = vtanh.f32 %v1074_v43  ;;  %v2675_v43 = vpack.c.bf16 %v1242_v42, %v1240_v41 }
0x12bd   :  { %v2841_v47 = vpop.eup %2840 }
0x12be   :  { %v1079_v48 = vadd.f32 1.0, %v2841_v47  ;;  %v2843_v50 = vpop.eup %2842  ;;  %v1241_v47 = vld [vmem:[%s3675_s6 + $0x50] sm:$0xff] }
0x12c0   :  { %2844 = vrcp.f32 %v1079_v48  ;;  %v2677_v48 = vpack.c.bf16 %v1241_v47, %v1239_v44 }
0x12ca   :  { %v2845_v52 = vpop.eup %2844 }
0x12cb   :  { %v1082_v53 = vsel %vm3147_vm5, %v2843_v50, %v2845_v52  ;;  %v1244_v50 = vld [vmem:[%s3675_s6 + $0x68] sm:$0xff]  ;;  %v1246_v52 = vld [vmem:[%s3675_s6 + $0x78] sm:$0xff] }
0x12cc   :  { %1085 = vrot.lane.b32.xlu0 %v1082_v53, %s2943_s5  ;;  %v1083_v56 = vmul.f32 %v1082_v53, %v981_v31  ;;  %v1233_v31 = vld [vmem:[%s3675_s6 + $0x10] sm:$0xff] }
0x133e   :  { %v1086_v54 = vpop.permute.xlu0 %1085 }
0x133f   :  { %v1088_v55 = vmul.f32 %v1086_v54, %v1082_v53  ;;  %v1243_v54 = vld [vmem:[%s3675_s6 + $0x60] sm:$0xff] }
0x1341   :  { %1090 = vrot.lane.b32.xlu1 %v1088_v55, %s2944_s20  ;;  %v1245_v55 = vld [vmem:[%s3675_s6 + $0x70] sm:$0xff] }
0x13b3   :  { %v1091_v58 = vpop.permute.xlu1 %1090 }
0x13b4   :  { %v1093_v59 = vadd.f32 %v1091_v58, %v1083_v56  ;;  %v2681_v56 = vpack.c.bf16 %v1245_v55, %v1243_v54 }
0x13b6   :  { %2846 = vtanh.f32 %v1093_v59 }
0x13c0   :  { %v2847_v60 = vpop.eup %2846 }
0x13c1   :  { %1096 = vrot.lane.b32.xlu0 %v2847_v60, %s2943_s5  ;;  %v1370_v60 = vld [vmem:[%s3676_s7 + $0x8] sm:$0xff] }
0x1433   :  { %v1097_v61 = vpop.permute.xlu0 %1096 }
0x1434   :  { %v1099_v62 = vmul.f32 %v1097_v61, %v1082_v53  ;;  %v2679_v53 = vpack.c.bf16 %v1246_v52, %v1244_v50  ;;  %v1372_v61 = vld [vmem:[%s3676_s7 + $0x18] sm:$0xff] }
0x1436   :  { %1101 = vrot.lane.b32.xlu1 %v1099_v62, %s2944_s20 }
0x14a8   :  { %v3269_v63 = vpop.permute.xlu1 %1101 }
0x14a9   :  { %2490 = vmatmul.mubr.msk.f32.vlgmr.msra.gmra.mrb[8].mxu0 %vm60_vm0, %v3269_v63 }
0x14aa   :  { %1444 = vmatprep.mubr.f32.mxu0 %v2942_v22 }
0x157c   :  { %v1186_v3 = vpop.f32.mrb[8].mxu0 }
0x157d   :  { %v1188_v5 = vpop.f32.mrb[9].mxu0 }
0x157e   :  { %v1191_v9 = vsel %vm297_vm1, %v1186_v3, %v1188_v5  ;;  %v1376_v3 = vld [vmem:[%s3676_s7 + $0x38] sm:$0xff] }
0x157f   :  { %v1192_v10 = vadd.f32 %v1191_v9, %v1117_v6  ;;  %v3378_v5 = vpack.c.bf16 %v1376_v3, %v1374_v2 }
0x1581   :  { %v2491_v11 = vmul.f32 -1.442695, %v1192_v10 }
0x1583   :  { %2848 = vpow2.f32 %v2491_v11 }
0x1584   :  { %2850 = vtanh.f32 %v1192_v10 }
0x158d   :  { %v2849_v12 = vpop.eup %2848 }
0x158e   :  { %v1197_v13 = vadd.f32 1.0, %v2849_v12  ;;  %v2851_v15 = vpop.eup %2850 }
0x1590   :  { %2852 = vrcp.f32 %v1197_v13 }
0x159a   :  { %v2853_v17 = vpop.eup %2852 }
0x159b   :  { %v1200_v18 = vsel %vm3147_vm5, %v2851_v15, %v2853_v17 }
0x159c   :  { %1203 = vrot.lane.b32.xlu0 %v1200_v18, %s2943_s5  ;;  %v1201_v28 = vmul.f32 %v1200_v18, %v1093_v59 }
0x160e   :  { %v1204_v19 = vpop.permute.xlu0 %1203 }
0x160f   :  { %v1206_v20 = vmul.f32 %v1204_v19, %v1200_v18 }
0x1611   :  { %1208 = vrot.lane.b32.xlu1 %v1206_v20, %s2944_s20  ;;  %v1247_v20 = vld [vmem:[%s3677_s8] sm:$0x3]  ;;  %s2945_s8 = smov 96  }
0x1615   :  { %1105 = vrot.lane.b32.xlu1 %v1099_v62, %s2943_s5  ;;  %v3356_v62 = vpack.c.bf16 %v1372_v61, %v1370_v60 }
0x1617   :  { %2684 = vmatprep.subr.bf16.mxu0 %v3356_v62 }
0x1619   :  { %875 = vrot.lane.b32.xlu1 %v3231_v7, %s2943_s5 }
0x161d   :  { %645 = vrot.lane.b32.xlu1 %v3194_v16, %s2943_s5  ;;  %v1234_v16 = vld [vmem:[%s3675_s6 + $0x18] sm:$0xff] }
0x1621   :  { %414 = vrot.lane.b32.xlu1 %v3156_v27, %s2943_s5  ;;  %v1232_v27 = vld [vmem:[%s3675_s6 + $0x8] sm:$0xff] }
0x1622   :  { %v2667_v30 = vpack.c.bf16 %v1234_v16, %v1232_v27 }
0x1624   :  { %2668 = vmatprep.subr.bf16.mxu1 %v2667_v30 }
0x1683   :  { %v1209_v21 = vpop.permute.xlu1 %1208 }
0x1684   :  { %v3288_v32 = vadd.f32 %v1209_v21, %v1201_v28  ;;  %v1252_v28 = vrot.slane %v1247_v20, %v170_v49  ;;  %v1256_v21 = vrot.slane %v1247_v20, %v174_v51 }
0x1686   :  { %2854 = vtanh.f32 %v3288_v32 }
0x1687   :  { %v1106_v34 = vpop.permute.xlu1 %1105 }
0x1688   :  { %1108 = vst.msk [vmem:[#allocation3] sm:$0xf0] %vm417_vm7, %v1106_v34 }
0x168b   :  { %v876_v23 = vpop.permute.xlu1 %875 }
0x168c   :  { %878 = vst.msk [vmem:[#allocation3 + $0x8] sm:$0xf0] %vm417_vm7, %v876_v23 }
0x168f   :  { %v646_v7 = vpop.permute.xlu1 %645 }
0x1690   :  { %v2855_v24 = vpop.eup %2854  ;;  %648 = vst.msk [vmem:[#allocation3 + $0x10] sm:$0xf0] %vm417_vm7, %v646_v7 }
0x1691   :  { %992 = vst.msk [vmem:[#allocation3 + $0x14] sm:$0xf] %vm412_vm6, %v3255_v25  ;;  %1214 = vrot.lane.b32.xlu0 %v2855_v24, %s2943_s5  ;;  %v2669_v25 = vpack.c.bf16 %v1233_v31, %v1231_v26 }
0x1693   :  { %v415_v29 = vpop.permute.xlu1 %414  ;;  %2670 = vmatpush1.bf16.msra.mxu1 %v2669_v25 }
0x1694   :  { %418 = vst.msk [vmem:[#allocation3 + $0x18] sm:$0xf0] %vm417_vm7, %v415_v29  ;;  %2672 = vmatprep.subr.bf16.mxu1 %v2671_v37 }
0x1697   :  { %2674 = vmatpush1.bf16.msra.mxu1 %v2673_v40 }
0x1698   :  { %2676 = vmatprep.subr.bf16.mxu1 %v2675_v43 }
0x169b   :  { %2678 = vmatpush1.bf16.msra.mxu1 %v2677_v48 }
0x169c   :  { %2680 = vmatprep.subr.bf16.mxu1 %v2679_v53 }
0x169f   :  { %2682 = vmatpush1.bf16.msra.mxu1 %v2681_v56 }
0x16a0   :  { %2708 = vmatprep.subr.bf16.mxu1 %v3356_v62 }
0x1703   :  { %v1215_v58 = vpop.permute.xlu0 %1214 }
0x1704   :  { %v1217_v59 = vmul.f32 %v1215_v58, %v1200_v18 }
0x1706   :  { %1219 = vrot.lane.b32.xlu1 %v1217_v59, %s2944_s20  ;;  %1223 = vrot.lane.b32.xlu0 %v1217_v59, %s2943_s5 }
0x170a   :  { %993 = vrot.lane.b32.xlu0 %v3251_v36, %s2943_s5  ;;  %v3366_v36 = vpack.c.bf16 %v1371_v1, %v1369_v0 }
0x170c   :  { %2686 = vmatpush1.bf16.msra.mxu0 %v3366_v36 }
0x170d   :  { %2688 = vmatprep.subr.bf16.mxu0 %v3378_v5 }
0x170e   :  { %763 = vrot.lane.b32.xlu0 %v3213_v46, %s2943_s5  ;;  %v1375_v46 = vld [vmem:[%s3676_s7 + $0x30] sm:$0xff] }
0x170f   :  { %v3385_v6 = vpack.c.bf16 %v1375_v46, %v1373_v4 }
0x1711   :  { %2690 = vmatpush1.bf16.msra.mxu0 %v3385_v6 }
0x1712   :  { %533 = vrot.lane.b32.xlu0 %v3175_v57, %s2943_s5  ;;  %2692 = vmatprep.subr.bf16.mxu0 %v3356_v62 }
0x1714   :  { %1445 = vmatmul.mubr.f32.vlgmr.msra.gmra.mrb[10].mxu0 %v2942_v22 }
0x1715   :  { %2694 = vmatpush1.bf16.msra.mxu0 %v3366_v36  ;;  %1556 = vmatprep.mubr.f32.mxu0 %v2942_v22 }
0x1716   :  { %2696 = vmatprep.subr.bf16.mxu0 %v3378_v5 }
0x1719   :  { %2698 = vmatpush1.bf16.msra.mxu0 %v3385_v6 }
0x171a   :  { %2700 = vmatprep.subr.bf16.mxu0 %v3356_v62 }
0x1778   :  { %v1220_v9 = vpop.permute.xlu1 %1219  ;;  %v1224_v10 = vpop.permute.xlu0 %1223 }
0x1779   :  { %1222 = vst.msk [vmem:[#allocation3 + $0x1c] sm:$0xf] %vm412_vm6, %v1220_v9 }
0x177a   :  { %1226 = vst.msk [vmem:[#allocation3 - $0x4] sm:$0xf0] %vm417_vm7, %v1224_v10 }
0x177c   :  { %v994_v57 = vpop.permute.xlu0 %993 }
0x177d   :  { %996 = vst.msk [vmem:[#allocation3 + $0x4] sm:$0xf0] %vm417_vm7, %v994_v57 }
0x1780   :  { %v764_v11 = vpop.permute.xlu0 %763 }
0x1781   :  { %v1227_v12 = vld [vmem:[#allocation3] sm:$0xff]  ;;  %766 = vst.msk [vmem:[#allocation3 + $0xc] sm:$0xf0] %vm417_vm7, %v764_v11 }
0x1782   :  { %2492 = vmatmul.mubr.msk.f32.vlgmr.msra.gmra.mrb[18].mxu1 %vm1259_vm8, %v1227_v12  ;;  %874 = vst.msk [vmem:[#allocation3 + $0x10] sm:$0xf] %vm412_vm6, %v3235_v8 }
0x1783   :  { %1342 = vmatprep.mubr.f32.mxu1 %v2942_v22  ;;  %2710 = vmatpush1.bf16.msra.mxu1 %v3366_v36 }
0x1784   :  { %2712 = vmatprep.subr.bf16.mxu1 %v3378_v5  ;;  %v534_v13 = vpop.permute.xlu0 %533  ;;  %v1228_v15 = vld [vmem:[#allocation3 + $0x8] sm:$0xff] }
0x1785   :  { %536 = vst.msk [vmem:[#allocation3 + $0x14] sm:$0xf0] %vm417_vm7, %v534_v13 }
0x1786   :  { %2493 = vmatmul.mubr.msk.f32.gmra.mrb[20].mxu1 %vm1259_vm8, %v1228_v15  ;;  %1104 = vst.msk [vmem:[#allocation3 + $0x18] sm:$0xf] %vm412_vm6, %v3269_v63 }
0x1787   :  { %1348 = vmatprep.mubr.f32.mxu1 %v2942_v22  ;;  %2714 = vmatpush1.bf16.msra.mxu1 %v3385_v6 }
0x1788   :  { %2724 = vmatprep.subr.bf16.mxu1 %v3356_v62 }
0x1789   :  { %v1229_v8 = vld [vmem:[#allocation3 + $0x10] sm:$0xff] }
0x178a   :  { %2494 = vmatmul.mubr.msk.f32.gmra.mrb[22].mxu1 %vm1259_vm8, %v1229_v8 }
0x178b   :  { %1354 = vmatprep.mubr.f32.mxu1 %v2942_v22 }
0x178d   :  { %v1230_v17 = vld [vmem:[#allocation3 + $0x18] sm:$0xff] }
0x178e   :  { %2495 = vmatmul.mubr.msk.f32.gmra.mrb[24].mxu1 %vm1259_vm8, %v1230_v17 }
0x178f   :  { %1774 = vmatprep.mubr.f32.mxu1 %v2942_v22 }
0x17e7   :  { %v1446_v18 = vpop.f32.mrb[10].mxu0 }
0x17e8   :  { %v1448_v19 = vpop.f32.mrb[11].mxu0 }
0x17e9   :  { %v1451_v63 = vsel %vm297_vm1, %v1446_v18, %v1448_v19 }
0x1855   :  { %v1338_v34 = vpop.f32.mrb[18].mxu1 }
0x1856   :  { %v1339_v23 = vadd.f32 %v1338_v34, %v1252_v28  ;;  %v1340_v7 = vpop.f32.mrb[19].mxu1 }
0x1857   :  { %v1341_v24 = vadd.f32 %v1340_v7, %v1256_v21 }
0x1858   :  { %1361 = vst [vmem:[#allocation2] sm:$0xff] %v1339_v23 }
0x1859   :  { %1362 = vst [vmem:[#allocation2 + $0x8] sm:$0xff] %v1341_v24  ;;  %v1344_v27 = vpop.f32.mrb[20].mxu1 }
0x185a   :  { %v1345_v16 = vadd.f32 %v1344_v27, %v1252_v28  ;;  %v1346_v26 = vpop.f32.mrb[21].mxu1 }
0x185b   :  { %v1347_v29 = vadd.f32 %v1346_v26, %v1256_v21 }
0x185c   :  { %1363 = vst [vmem:[#allocation2 + $0x10] sm:$0xff] %v1345_v16 }
0x185d   :  { %1364 = vst [vmem:[#allocation2 + $0x18] sm:$0xff] %v1347_v29  ;;  %v1350_v30 = vpop.f32.mrb[22].mxu1 }
0x185e   :  { %v1351_v31 = vadd.f32 %v1350_v30, %v1252_v28  ;;  %v1352_v33 = vpop.f32.mrb[23].mxu1 }
0x185f   :  { %v1353_v35 = vadd.f32 %v1352_v33, %v1256_v21  ;;  %v1377_v38 = vld [vmem:[#allocation2] sm:$0xf]  ;;  %v1478_v1 = vld [vmem:[#allocation2] sm:$0xf0] }
0x1860   :  { %1365 = vst [vmem:[#allocation2 + $0x20] sm:$0xff] %v1351_v31  ;;  %v1481_v4 = vrot.slane %v1478_v1, 4 }
0x1861   :  { %1366 = vst [vmem:[#allocation2 + $0x28] sm:$0xff] %v1353_v35  ;;  %v1356_v49 = vpop.f32.mrb[24].mxu1 }
0x1862   :  { %v1357_v51 = vadd.f32 %v1356_v49, %v1252_v28  ;;  %v1358_v25 = vpop.f32.mrb[25].mxu1 }
0x1863   :  { %v1359_v37 = vadd.f32 %v1358_v25, %v1256_v21  ;;  %v1590_v16 = vld [vmem:[#allocation2 + $0x10] sm:$0xf] }
0x1864   :  { %1367 = vst [vmem:[#allocation2 + $0x30] sm:$0xff] %v1357_v51 }
0x1865   :  { %1368 = vst [vmem:[#allocation2 + $0x38] sm:$0xff] %v1359_v37 }
0x1868   :  { %v1591_v24 = vld [vmem:[#allocation2 + $0x28] sm:$0xf0] }
0x1869   :  { %v1592_v29 = vsel %vm305_vm2, %v1590_v16, %v1591_v24 }
0x186c   :  { %v1378_v39 = vld [vmem:[#allocation2 + $0x38] sm:$0xf0]  ;;  %v1479_v0 = vld [vmem:[#allocation2 + $0x38] sm:$0xf] }
0x186d   :  { %v1379_v40 = vsel %vm305_vm2, %v1377_v38, %v1378_v39  ;;  %v1484_v2 = vrot.slane %v1479_v0, 4 }
0x186e   :  { %v1452_v41 = vadd.f32 %v1451_v63, %v1379_v40 }
0x186f   :  { %v1486_v9 = vsel %vm305_vm2, %v1481_v4, %v1484_v2 }
0x1870   :  { %v2496_v42 = vmul.f32 -1.442695, %v1452_v41 }
0x1872   :  { %2856 = vpow2.f32 %v2496_v42 }
0x1873   :  { %2858 = vtanh.f32 %v1452_v41 }
0x187c   :  { %v2857_v43 = vpop.eup %2856 }
0x187d   :  { %v1457_v44 = vadd.f32 1.0, %v2857_v43  ;;  %v2859_v47 = vpop.eup %2858 }
0x187f   :  { %2860 = vrcp.f32 %v1457_v44 }
0x1889   :  { %v2861_v48 = vpop.eup %2860 }
0x188a   :  { %v1460_v50 = vsel %vm3147_vm5, %v2859_v47, %v2861_v48 }
0x188b   :  { %1463 = vrot.lane.b32.xlu0 %v1460_v50, %s2943_s5  ;;  %v1461_v54 = vmul.f32 0.0, %v1460_v50 }
0x18fd   :  { %v1464_v52 = vpop.permute.xlu0 %1463 }
0x18fe   :  { %v1466_v53 = vmul.f32 %v1464_v52, %v1460_v50  ;;  %v1696_v52 = vld [vmem:[#allocation2 + $0x10] sm:$0xf0] }
0x1900   :  { %1468 = vrot.lane.b32.xlu1 %v1466_v53, %s2944_s20 }
0x1972   :  { %v1469_v55 = vpop.permute.xlu1 %1468 }
0x1973   :  { %v1471_v56 = vadd.f32 %v1469_v55, %v1461_v54  ;;  %v1699_v55 = vrot.slane %v1696_v52, 4 }
0x1975   :  { %2862 = vtanh.f32 %v1471_v56 }
0x197f   :  { %v2863_v58 = vpop.eup %2862 }
0x1980   :  { %1474 = vrot.lane.b32.xlu0 %v2863_v58, %s2943_s5 }
0x19f2   :  { %v1475_v59 = vpop.permute.xlu0 %1474 }
0x19f3   :  { %v1477_v60 = vmul.f32 %v1475_v59, %v1460_v50  ;;  %v1697_v50 = vld [vmem:[#allocation2 + $0x28] sm:$0xf] }
0x19f4   :  { %v1702_v53 = vrot.slane %v1697_v50, 4 }
0x19f5   :  { %1488 = vrot.lane.b32.xlu1 %v1477_v60, %s2944_s20 }
0x19f6   :  { %v1704_v58 = vsel %vm305_vm2, %v1699_v55, %v1702_v53 }
0x1a67   :  { %v1489_v61 = vpop.permute.xlu1 %1488 }
0x1a68   :  { %2497 = vmatmul.mubr.msk.f32.vlgmr.msra.gmra.mrb[12].mxu0 %vm60_vm0, %v1489_v61 }
0x1a69   :  { %2702 = vmatpush1.bf16.msra.mxu0 %v3366_v36  ;;  %1662 = vmatprep.mubr.f32.mxu0 %v2942_v22 }
0x1a6a   :  { %2704 = vmatprep.subr.bf16.mxu0 %v3378_v5 }
0x1a6d   :  { %2706 = vmatpush1.bf16.msra.mxu0 %v3385_v6 }
0x1a6e   :  { %2716 = vmatprep.subr.bf16.mxu0 %v3356_v62 }
0x1b3b   :  { %v1558_v3 = vpop.f32.mrb[12].mxu0 }
0x1b3c   :  { %v1560_v46 = vpop.f32.mrb[13].mxu0 }
0x1b3d   :  { %v1563_v10 = vsel %vm297_vm1, %v1558_v3, %v1560_v46 }
0x1b3e   :  { %v1564_v57 = vadd.f32 %v1563_v10, %v1486_v9 }
0x1b40   :  { %v2498_v11 = vmul.f32 -1.442695, %v1564_v57 }
0x1b42   :  { %2864 = vpow2.f32 %v2498_v11 }
0x1b43   :  { %2866 = vtanh.f32 %v1564_v57 }
0x1b4c   :  { %v2865_v12 = vpop.eup %2864 }
0x1b4d   :  { %v1569_v13 = vadd.f32 1.0, %v2865_v12  ;;  %v2867_v15 = vpop.eup %2866 }
0x1b4f   :  { %2868 = vrcp.f32 %v1569_v13 }
0x1b59   :  { %v2869_v8 = vpop.eup %2868 }
0x1b5a   :  { %v1572_v17 = vsel %vm3147_vm5, %v2867_v15, %v2869_v8  ;;  %v1808_v8 = vld [vmem:[#allocation2 + $0x20] sm:$0xf] }
0x1b5b   :  { %1575 = vrot.lane.b32.xlu0 %v1572_v17, %s2943_s5  ;;  %v1573_v63 = vmul.f32 %v1572_v17, %v1471_v56 }
0x1bcd   :  { %v1576_v18 = vpop.permute.xlu0 %1575 }
0x1bce   :  { %v1578_v19 = vmul.f32 %v1576_v18, %v1572_v17  ;;  %v1809_v18 = vld [vmem:[#allocation2 + $0x18] sm:$0xf0] }
0x1bd0   :  { %1580 = vrot.lane.b32.xlu1 %v1578_v19, %s2944_s20 }
0x1c42   :  { %v1581_v20 = vpop.permute.xlu1 %1580 }
0x1c43   :  { %v1583_v28 = vadd.f32 %v1581_v20, %v1573_v63  ;;  %v1810_v63 = vsel %vm305_vm2, %v1808_v8, %v1809_v18 }
0x1c45   :  { %2870 = vtanh.f32 %v1583_v28 }
0x1c4f   :  { %v2871_v21 = vpop.eup %2870 }
0x1c50   :  { %1586 = vrot.lane.b32.xlu0 %v2871_v21, %s2943_s5 }
0x1cc2   :  { %v1587_v34 = vpop.permute.xlu0 %1586 }
0x1cc3   :  { %v1589_v23 = vmul.f32 %v1587_v34, %v1572_v17 }
0x1cc5   :  { %1594 = vrot.lane.b32.xlu1 %v1589_v23, %s2944_s20 }
0x1d37   :  { %v1595_v7 = vpop.permute.xlu1 %1594 }
0x1d38   :  { %2499 = vmatmul.mubr.msk.f32.vlgmr.msra.gmra.mrb[14].mxu0 %vm60_vm0, %v1595_v7 }
0x1d39   :  { %2718 = vmatpush1.bf16.msra.mxu0 %v3366_v36  ;;  %1880 = vmatprep.mubr.f32.mxu0 %v2942_v22 }
0x1d3a   :  { %2720 = vmatprep.subr.bf16.mxu0 %v3378_v5 }
0x1d3d   :  { %2722 = vmatpush1.bf16.msra.mxu0 %v3385_v6 }
0x1d3e   :  { %2732 = vmatprep.subr.bf16.mxu0 %v3356_v62 }
0x1e0b   :  { %v1664_v27 = vpop.f32.mrb[14].mxu0 }
0x1e0c   :  { %v1666_v26 = vpop.f32.mrb[15].mxu0 }
0x1e0d   :  { %v1669_v30 = vsel %vm297_vm1, %v1664_v27, %v1666_v26 }
0x1e0e   :  { %v1670_v31 = vadd.f32 %v1669_v30, %v1592_v29 }
0x1e10   :  { %v2500_v33 = vmul.f32 -1.442695, %v1670_v31 }
0x1e12   :  { %2872 = vpow2.f32 %v2500_v33 }
0x1e13   :  { %2874 = vtanh.f32 %v1670_v31 }
0x1e1c   :  { %v2873_v35 = vpop.eup %2872 }
0x1e1d   :  { %v1675_v49 = vadd.f32 1.0, %v2873_v35  ;;  %v2875_v51 = vpop.eup %2874 }
0x1e1f   :  { %2876 = vrcp.f32 %v1675_v49 }
0x1e29   :  { %v2877_v25 = vpop.eup %2876 }
0x1e2a   :  { %v1678_v37 = vsel %vm3147_vm5, %v2875_v51, %v2877_v25  ;;  %v1914_v25 = vld [vmem:[#allocation2 + $0x20] sm:$0xf0] }
0x1e2b   :  { %1681 = vrot.lane.b32.xlu0 %v1678_v37, %s2943_s5  ;;  %v1679_v40 = vmul.f32 %v1678_v37, %v1583_v28 }
0x1e9d   :  { %v1682_v38 = vpop.permute.xlu0 %1681 }
0x1e9e   :  { %v1684_v39 = vmul.f32 %v1682_v38, %v1678_v37  ;;  %v1917_v38 = vrot.slane %v1914_v25, 4 }
0x1ea0   :  { %1686 = vrot.lane.b32.xlu1 %v1684_v39, %s2944_s20 }
0x1f12   :  { %v1687_v41 = vpop.permute.xlu1 %1686 }
0x1f13   :  { %v1689_v42 = vadd.f32 %v1687_v41, %v1679_v40 }
0x1f15   :  { %2878 = vtanh.f32 %v1689_v42 }
0x1f1f   :  { %v2879_v43 = vpop.eup %2878 }
0x1f20   :  { %1692 = vrot.lane.b32.xlu0 %v2879_v43, %s2943_s5 }
0x1f92   :  { %v1693_v44 = vpop.permute.xlu0 %1692 }
0x1f93   :  { %v1695_v47 = vmul.f32 %v1693_v44, %v1678_v37  ;;  %v1915_v37 = vld [vmem:[#allocation2 + $0x18] sm:$0xf] }
0x1f94   :  { %v1920_v40 = vrot.slane %v1915_v37, 4  ;;  %v2276_v37 = vld [vmem:[%s3678_s9 + $0x88] sm:$0xff] }
0x1f95   :  { %1706 = vrot.lane.b32.xlu1 %v1695_v47, %s2944_s20 }
0x2007   :  { %v1707_v48 = vpop.permute.xlu1 %1706 }
0x2008   :  { %2501 = vmatmul.mubr.msk.f32.vlgmr.msra.gmra.mrb[26].mxu1 %vm60_vm0, %v1707_v48 }
0x2009   :  { %2726 = vmatpush1.bf16.msra.mxu1 %v3366_v36  ;;  %1992 = vmatprep.mubr.f32.mxu1 %v2942_v22 }
0x200a   :  { %2728 = vmatprep.subr.bf16.mxu1 %v3378_v5 }
0x200d   :  { %2730 = vmatpush1.bf16.msra.mxu1 %v3385_v6 }
0x200e   :  { %2740 = vmatprep.subr.bf16.mxu1 %v3356_v62 }
0x20db   :  { %v1776_v54 = vpop.f32.mrb[26].mxu1 }
0x20dc   :  { %v1778_v56 = vpop.f32.mrb[27].mxu1 }
0x20dd   :  { %v1781_v59 = vsel %vm297_vm1, %v1776_v54, %v1778_v56 }
0x20de   :  { %v1782_v60 = vadd.f32 %v1781_v59, %v1704_v58 }
0x20e0   :  { %v2502_v61 = vmul.f32 -1.442695, %v1782_v60 }
0x20e2   :  { %2880 = vpow2.f32 %v2502_v61 }
0x20e3   :  { %2882 = vtanh.f32 %v1782_v60 }
0x20ec   :  { %v2881_v0 = vpop.eup %2880 }
0x20ed   :  { %v1787_v1 = vadd.f32 1.0, %v2881_v0  ;;  %v2883_v2 = vpop.eup %2882  ;;  %v2026_v0 = vld [vmem:[#allocation2 + $0x30] sm:$0xf] }
0x20ef   :  { %2884 = vrcp.f32 %v1787_v1 }
0x20f9   :  { %v2885_v62 = vpop.eup %2884 }
0x20fa   :  { %v1790_v3 = vsel %vm3147_vm5, %v2883_v2, %v2885_v62  ;;  %v2027_v2 = vld [vmem:[#allocation2 + $0x8] sm:$0xf0] }
0x20fb   :  { %1793 = vrot.lane.b32.xlu0 %v1790_v3, %s2943_s5  ;;  %v1791_v9 = vmul.f32 %v1790_v3, %v1689_v42  ;;  %v1922_v42 = vsel %vm305_vm2, %v1917_v38, %v1920_v40  ;;  %v2747_v38 = vpack.c.bf16 %v2276_v37, %v2275_v45  ;;  %v2277_v40 = vld [vmem:[%s3678_s9 + $0x90] sm:$0xff] }
0x216d   :  { %v1794_v4 = vpop.permute.xlu0 %1793 }
0x216e   :  { %v1796_v46 = vmul.f32 %v1794_v4, %v1790_v3 }
0x2170   :  { %1798 = vrot.lane.b32.xlu1 %v1796_v46, %s2944_s20 }
0x21e2   :  { %v1799_v10 = vpop.permute.xlu1 %1798 }
0x21e3   :  { %v1801_v57 = vadd.f32 %v1799_v10, %v1791_v9 }
0x21e5   :  { %2886 = vtanh.f32 %v1801_v57 }
0x21ef   :  { %v2887_v11 = vpop.eup %2886 }
0x21f0   :  { %1804 = vrot.lane.b32.xlu0 %v2887_v11, %s2943_s5 }
0x2262   :  { %v1805_v12 = vpop.permute.xlu0 %1804 }
0x2263   :  { %v1807_v13 = vmul.f32 %v1805_v12, %v1790_v3  ;;  %v2028_v3 = vsel %vm305_vm2, %v2026_v0, %v2027_v2  ;;  %v2283_v0 = vld [vmem:[%s3678_s9 + $0xc0] sm:$0xff] }
0x2265   :  { %1812 = vrot.lane.b32.xlu1 %v1807_v13, %s2944_s20 }
0x22d7   :  { %v1813_v15 = vpop.permute.xlu1 %1812 }
0x22d8   :  { %2503 = vmatmul.mubr.msk.f32.vlgmr.msra.gmra.mrb[16].mxu0 %vm60_vm0, %v1813_v15 }
0x22d9   :  { %2734 = vmatpush1.bf16.msra.mxu0 %v3366_v36  ;;  %2098 = vmatprep.mubr.f32.mxu0 %v2942_v22 }
0x22da   :  { %2736 = vmatprep.subr.bf16.mxu0 %v3378_v5 }
0x22dd   :  { %2738 = vmatpush1.bf16.msra.mxu0 %v3385_v6 }
0x22de   :  { %2748 = vmatprep.subr.bf16.mxu0 %v2747_v38  ;;  %v2371_v38 = vld [vmem:[%s3680_s11 + $0x10] sm:$0xff] }
0x23ab   :  { %v1882_v17 = vpop.f32.mrb[16].mxu0 }
0x23ac   :  { %v1884_v19 = vpop.f32.mrb[17].mxu0 }
0x23ad   :  { %v1887_v20 = vsel %vm297_vm1, %v1882_v17, %v1884_v19 }
0x23ae   :  { %v1888_v28 = vadd.f32 %v1887_v20, %v1810_v63 }
0x23b0   :  { %v2504_v21 = vmul.f32 -1.442695, %v1888_v28 }
0x23b2   :  { %2888 = vpow2.f32 %v2504_v21 }
0x23b3   :  { %2890 = vtanh.f32 %v1888_v28 }
0x23bc   :  { %v2889_v34 = vpop.eup %2888 }
0x23bd   :  { %v1893_v23 = vadd.f32 1.0, %v2889_v34  ;;  %v2891_v7 = vpop.eup %2890  ;;  %v2132_v34 = vld [vmem:[#allocation2 + $0x30] sm:$0xf0] }
0x23bf   :  { %2892 = vrcp.f32 %v1893_v23  ;;  %v2133_v23 = vld [vmem:[#allocation2 + $0x8] sm:$0xf] }
0x23c9   :  { %v2893_v24 = vpop.eup %2892 }
0x23ca   :  { %v1896_v27 = vsel %vm3147_vm5, %v2891_v7, %v2893_v24  ;;  %v2135_v7 = vrot.slane %v2132_v34, 4 }
0x23cb   :  { %1899 = vrot.lane.b32.xlu0 %v1896_v27, %s2943_s5  ;;  %v1897_v29 = vmul.f32 %v1896_v27, %v1801_v57 }
0x243d   :  { %v1900_v16 = vpop.permute.xlu0 %1899 }
0x243e   :  { %v1902_v26 = vmul.f32 %v1900_v16, %v1896_v27 }
0x2440   :  { %1904 = vrot.lane.b32.xlu1 %v1902_v26, %s2944_s20 }
0x24b2   :  { %v1905_v30 = vpop.permute.xlu1 %1904 }
0x24b3   :  { %v1907_v31 = vadd.f32 %v1905_v30, %v1897_v29 }
0x24b5   :  { %2894 = vtanh.f32 %v1907_v31 }
0x24bf   :  { %v2895_v33 = vpop.eup %2894 }
0x24c0   :  { %1910 = vrot.lane.b32.xlu0 %v2895_v33, %s2943_s5 }
0x2532   :  { %v1911_v35 = vpop.permute.xlu0 %1910 }
0x2533   :  { %v1913_v49 = vmul.f32 %v1911_v35, %v1896_v27  ;;  %v2138_v27 = vrot.slane %v2133_v23, 4  ;;  %v2273_v23 = vld [vmem:[%s3678_s9 + $0x70] sm:$0xff] }
0x2535   :  { %1924 = vrot.lane.b32.xlu1 %v1913_v49, %s2944_s20  ;;  %v2140_v26 = vsel %vm305_vm2, %v2135_v7, %v2138_v27  ;;  %v2274_v7 = vld [vmem:[%s3678_s9 + $0x78] sm:$0xff] }
0x25a7   :  { %v1925_v51 = vpop.permute.xlu1 %1924 }
0x25a8   :  { %2505 = vmatmul.mubr.msk.f32.vlgmr.msra.gmra.mrb[28].mxu1 %vm60_vm0, %v1925_v51 }
0x25a9   :  { %2742 = vmatpush1.bf16.msra.mxu1 %v3366_v36  ;;  %2210 = vmatprep.mubr.f32.mxu1 %v2942_v22 }
0x25aa   :  { %2744 = vmatprep.subr.bf16.mxu1 %v3378_v5 }
0x25ad   :  { %2746 = vmatpush1.bf16.msra.mxu1 %v3385_v6 }
0x267b   :  { %v1994_v39 = vpop.f32.mrb[28].mxu1 }
0x267c   :  { %v1996_v41 = vpop.f32.mrb[29].mxu1 }
0x267d   :  { %v1999_v43 = vsel %vm297_vm1, %v1994_v39, %v1996_v41  ;;  %v2260_v39 = vld [vmem:[%s3678_s9 + $0x8] sm:$0xff]  ;;  %v2278_v41 = vld [vmem:[%s3678_s9 + $0x98] sm:$0xff] }
0x267e   :  { %v2000_v44 = vadd.f32 %v1999_v43, %v1922_v42  ;;  %v2749_v42 = vpack.c.bf16 %v2260_v39, %v2259_v14  ;;  %v2751_v43 = vpack.c.bf16 %v2278_v41, %v2277_v40  ;;  %v2946_v14 = vmov 0.0|0.0   ;;  %v2372_v39 = vld [vmem:[%s3680_s11 + $0x18] sm:$0xff] }
0x267f   :  { %2779 = vmatprep.subr.bf16.mxu1 %v2946_v14  ;;  %v2783_v40 = vpack.c.bf16 %v2372_v39, %v2371_v38 }
0x2680   :  { %v2506_v47 = vmul.f32 -1.442695, %v2000_v44 }
0x2682   :  { %2896 = vpow2.f32 %v2506_v47  ;;  %v2262_v47 = vld [vmem:[%s3678_s9 + $0x18] sm:$0xff] }
0x2683   :  { %2898 = vtanh.f32 %v2000_v44  ;;  %v2261_v44 = vld [vmem:[%s3678_s9 + $0x10] sm:$0xff] }
0x268c   :  { %v2897_v36 = vpop.eup %2896 }
0x268d   :  { %v2005_v48 = vadd.f32 1.0, %v2897_v36  ;;  %v2899_v5 = vpop.eup %2898  ;;  %v2279_v36 = vld [vmem:[%s3678_s9 + $0xa0] sm:$0xff] }
0x268f   :  { %2900 = vrcp.f32 %v2005_v48  ;;  %v2280_v48 = vld [vmem:[%s3678_s9 + $0xa8] sm:$0xff] }
0x2699   :  { %v2901_v6 = vpop.eup %2900 }
0x269a   :  { %v2008_v50 = vsel %vm3147_vm5, %v2899_v5, %v2901_v6  ;;  %v2753_v5 = vpack.c.bf16 %v2262_v47, %v2261_v44  ;;  %v2755_v6 = vpack.c.bf16 %v2280_v48, %v2279_v36  ;;  %v2512_v48 = vld [vmem:[%s3681_s12] ss:$0 sm:$0xff] }
0x269b   :  { %2011 = vrot.lane.b32.xlu0 %v2008_v50, %s2943_s5  ;;  %v2009_v54 = vmul.f32 %v2008_v50, %v1907_v31 }
0x270d   :  { %v2012_v52 = vpop.permute.xlu0 %2011 }
0x270e   :  { %v2014_v53 = vmul.f32 %v2012_v52, %v2008_v50  ;;  %v2264_v52 = vld [vmem:[%s3678_s9 + $0x28] sm:$0xff] }
0x2710   :  { %2016 = vrot.lane.b32.xlu1 %v2014_v53, %s2944_s20 }
0x2782   :  { %v2017_v55 = vpop.permute.xlu1 %2016 }
0x2783   :  { %v2019_v56 = vadd.f32 %v2017_v55, %v2009_v54  ;;  %v2281_v54 = vld [vmem:[%s3678_s9 + $0xb0] sm:$0xff]  ;;  %v2282_v55 = vld [vmem:[%s3678_s9 + $0xb8] sm:$0xff] }
0x2785   :  { %2902 = vtanh.f32 %v2019_v56 }
0x278f   :  { %v2903_v58 = vpop.eup %2902 }
0x2790   :  { %2022 = vrot.lane.b32.xlu0 %v2903_v58, %s2943_s5 }
0x2802   :  { %v2023_v59 = vpop.permute.xlu0 %2022 }
0x2803   :  { %v2025_v60 = vmul.f32 %v2023_v59, %v2008_v50  ;;  %v2263_v50 = vld [vmem:[%s3678_s9 + $0x20] sm:$0xff]  ;;  %v2759_v59 = vpack.c.bf16 %v2282_v55, %v2281_v54 }
0x2804   :  { %v2757_v58 = vpack.c.bf16 %v2264_v52, %v2263_v50 }
0x2805   :  { %2030 = vrot.lane.b32.xlu1 %v2025_v60, %s2944_s20  ;;  %v2265_v60 = vld [vmem:[%s3678_s9 + $0x30] sm:$0xff] }
0x2877   :  { %v2031_v61 = vpop.permute.xlu1 %2030 }
0x2878   :  { %2507 = vmatmul.mubr.msk.f32.vlgmr.msra.gmra.mrb[18].mxu0 %vm60_vm0, %v2031_v61  ;;  %v2266_v61 = vld [vmem:[%s3678_s9 + $0x38] sm:$0xff] }
0x2879   :  { %2750 = vmatpush3.bf16.msra.mxu0 %v2749_v42  ;;  %v2761_v2 = vpack.c.bf16 %v2266_v61, %v2265_v60  ;;  %v2511_v42 = vld [vmem:[%s3679_s10] ss:$0 sm:$0xff] }
0x287a   :  { %2752 = vmatprep.subr.bf16.mxu0 %v2751_v43 }
0x287d   :  { %2754 = vmatpush3.bf16.msra.mxu0 %v2753_v5 }
0x287e   :  { %2756 = vmatprep.subr.bf16.mxu0 %v2755_v6 }
0x2881   :  { %2758 = vmatpush3.bf16.msra.mxu0 %v2757_v58 }
0x2882   :  { %2760 = vmatprep.subr.bf16.mxu0 %v2759_v59 }
0x2885   :  { %2762 = vmatpush3.bf16.msra.mxu0 %v2761_v2 }
0x294b   :  { %v2100_v1 = vpop.f32.mrb[18].mxu0 }
0x294c   :  { %v2102_v62 = vpop.f32.mrb[19].mxu0 }
0x294d   :  { %v2105_v4 = vsel %vm297_vm1, %v2100_v1, %v2102_v62  ;;  %v2284_v1 = vld [vmem:[%s3678_s9 + $0xc8] sm:$0xff] }
0x294e   :  { %v2106_v46 = vadd.f32 %v2105_v4, %v2028_v3  ;;  %v2763_v62 = vpack.c.bf16 %v2284_v1, %v2283_v0  ;;  %v2267_v3 = vld [vmem:[%s3678_s9 + $0x40] sm:$0xff]  ;;  %v2268_v4 = vld [vmem:[%s3678_s9 + $0x48] sm:$0xff] }
0x2950   :  { %v2508_v9 = vmul.f32 -1.442695, %v2106_v46  ;;  %2764 = vmatprep.subr.bf16.mxu0 %v2763_v62 }
0x2952   :  { %2904 = vpow2.f32 %v2508_v9  ;;  %v2286_v9 = vld [vmem:[%s3678_s9 + $0xd8] sm:$0xff] }
0x2953   :  { %2906 = vtanh.f32 %v2106_v46  ;;  %v2285_v46 = vld [vmem:[%s3678_s9 + $0xd0] sm:$0xff] }
0x295c   :  { %v2905_v10 = vpop.eup %2904 }
0x295d   :  { %v2111_v57 = vadd.f32 1.0, %v2905_v10  ;;  %v2907_v11 = vpop.eup %2906  ;;  %v2765_v10 = vpack.c.bf16 %v2268_v4, %v2267_v3 }
0x295f   :  { %2908 = vrcp.f32 %v2111_v57  ;;  %v2767_v57 = vpack.c.bf16 %v2286_v9, %v2285_v46  ;;  %2766 = vmatpush3.bf16.msra.mxu0 %v2765_v10 }
0x2961   :  { %2768 = vmatprep.subr.bf16.mxu0 %v2767_v57 }
0x2969   :  { %v2909_v12 = vpop.eup %2908 }
0x296a   :  { %v2114_v13 = vsel %vm3147_vm5, %v2907_v11, %v2909_v12  ;;  %v2269_v11 = vld [vmem:[%s3678_s9 + $0x50] sm:$0xff]  ;;  %v2270_v12 = vld [vmem:[%s3678_s9 + $0x58] sm:$0xff] }
0x296b   :  { %2117 = vrot.lane.b32.xlu0 %v2114_v13, %s2943_s5  ;;  %v2115_v17 = vmul.f32 %v2114_v13, %v2019_v56 }
0x29dd   :  { %v2118_v15 = vpop.permute.xlu0 %2117 }
0x29de   :  { %v2120_v8 = vmul.f32 %v2118_v15, %v2114_v13  ;;  %v2288_v15 = vld [vmem:[%s3678_s9 + $0xe8] sm:$0xff] }
0x29e0   :  { %2122 = vrot.lane.b32.xlu1 %v2120_v8, %s2944_s20  ;;  %v2769_v8 = vpack.c.bf16 %v2270_v12, %v2269_v11 }
0x29e2   :  { %2770 = vmatpush3.bf16.msra.mxu0 %v2769_v8 }
0x2a52   :  { %v2123_v18 = vpop.permute.xlu1 %2122 }
0x2a53   :  { %v3516_v19 = vadd.f32 %v2123_v18, %v2115_v17  ;;  %v2271_v18 = vld [vmem:[%s3678_s9 + $0x60] sm:$0xff] }
0x2a55   :  { %2910 = vtanh.f32 %v3516_v19 }
0x2a5f   :  { %v2911_v63 = vpop.eup %2910 }
0x2a60   :  { %2128 = vrot.lane.b32.xlu0 %v2911_v63, %s2943_s5  ;;  %v2272_v63 = vld [vmem:[%s3678_s9 + $0x68] sm:$0xff] }
0x2ad2   :  { %v2129_v20 = vpop.permute.xlu0 %2128 }
0x2ad3   :  { %v2131_v28 = vmul.f32 %v2129_v20, %v2114_v13  ;;  %v2287_v13 = vld [vmem:[%s3678_s9 + $0xe0] sm:$0xff]  ;;  %v2773_v20 = vpack.c.bf16 %v2272_v63, %v2271_v18 }
0x2ad4   :  { %v2771_v17 = vpack.c.bf16 %v2288_v15, %v2287_v13 }
0x2ad5   :  { %2142 = vrot.lane.b32.xlu1 %v2131_v28, %s2944_s20  ;;  %v2289_v28 = vld [vmem:[%s3678_s9 + $0xf0] sm:$0xff] }
0x2ad6   :  { %2772 = vmatprep.subr.bf16.mxu0 %v2771_v17 }
0x2ad7   :  { %2774 = vmatpush3.bf16.msra.mxu0 %v2773_v20 }
0x2b47   :  { %v2143_v21 = vpop.permute.xlu1 %2142 }
0x2b48   :  { %2509 = vmatmul.mubr.msk.f32.vlgmr.msra.gmra.mrb[30].mxu1 %vm60_vm0, %v2143_v21  ;;  %v2290_v21 = vld [vmem:[%s3678_s9 + $0xf8] sm:$0xff] }
0x2b49   :  { %v2775_v34 = vpack.c.bf16 %v2290_v21, %v2289_v28  ;;  %2584 = vmatprep.mubr.msk.f32.mxu1 %vm2947_vm10, %v2942_v22 }
0x2b4b   :  { %2776 = vmatprep.subr.bf16.mxu0 %v2775_v34 }
0x2c1b   :  { %v2212_v24 = vpop.f32.mrb[30].mxu1 }
0x2c1c   :  { %v2214_v16 = vpop.f32.mrb[31].mxu1 }
0x2c1d   :  { %v2217_v29 = vsel %vm297_vm1, %v2212_v24, %v2214_v16  ;;  %v2777_v24 = vpack.c.bf16 %v2274_v7, %v2273_v23 }
0x2c1e   :  { %v2218_v30 = vadd.f32 %v2217_v29, %v2140_v26 }
0x2c1f   :  { %2778 = vmatpush3.bf16.msra.mxu0 %v2777_v24 }
0x2c20   :  { %v2510_v31 = vmul.f32 -1.442695, %v2218_v30 }
0x2c22   :  { %2912 = vpow2.f32 %v2510_v31  ;;  %v2242_v31 = vrot.slane %v3288_v32, 4 }
0x2c23   :  { %2914 = vtanh.f32 %v2218_v30 }
0x2c2c   :  { %v2913_v33 = vpop.eup %2912 }
0x2c2d   :  { %v2223_v35 = vadd.f32 1.0, %v2913_v33  ;;  %v2915_v49 = vpop.eup %2914 }
0x2c2f   :  { %2916 = vrcp.f32 %v2223_v35 }
0x2c39   :  { %v2917_v51 = vpop.eup %2916 }
0x2c3a   :  { %v3527_v25 = vsel %vm3147_vm5, %v2915_v49, %v2917_v51 }
0x2c3b   :  { %2229 = vrot.lane.b32.xlu0 %v3527_v25, %s2943_s5  ;;  %v2227_v27 = vmul.f32 %v3527_v25, %v3516_v19  ;;  %v2369_v19 = vld [vmem:[%s3680_s11] sm:$0xff] }
0x2c3f   :  { %2239 = vrot.lane.b32.xlu0 %v3288_v32, %s2945_s8 }
0x2cad   :  { %v2230_v53 = vpop.permute.xlu0 %2229 }
0x2cae   :  { %v2232_v56 = vmul.f32 %v2230_v53, %v3527_v25  ;;  %v2370_v25 = vld [vmem:[%s3680_s11 + $0x8] sm:$0xff]  ;;  %s2948_s11 = smov [#allocation4]  }
0x2caf   :  { %v2780_v32 = vpack.c.bf16 %v2370_v25, %v2369_v19  ;;  %s2460_s3 = sshll.u32 %s2948_s11, 4  ;;  %s2461_s3 = int_to_ptr.vmem [resolvable:$true] %s2460_s3 }
0x2cb0   :  { %2234 = vrot.lane.b32.xlu1 %v2232_v56, %s2944_s20  ;;  %s2918_s26 = scalar_lea.vmem %s2461_s3, 32  ;;  %p2923_p1 = scmp.lt.s32.totalorder %s2461_s3, %s2461_s3 }
0x2cb1   :  { %v2240_v30 = vpop.permute.xlu0 %2239  ;;  %2781 = vmatpush3.bf16.msra.mxu1 %v2780_v32  ;;  %p2919_p0 = scmp.ne.s32.totalorder %s2461_s3, %s2918_s26  ;;  %p2924_p2 = scmp.lt.s32.totalorder %s2918_s26, %s2918_s26 }
0x2cb2   :  { %v2252_v33 = vsel %vm60_vm0, %v2240_v30, %v2242_v31  ;;  %2782 = vmatprep.subr.bf16.mxu1 %v2946_v14 }
0x2cb3   :  { %p2925_p3 = por %p2924_p2, %p2923_p1 }
0x2cb5   :  { %2784 = vmatpush3.bf16.msra.mxu1 %v2783_v40  ;;  %p2926_p4 = pnand %p2925_p3, %p2919_p0 }
0x2d22   :  { %v2235_v16 = vpop.permute.xlu1 %2234 }
0x2d23   :  { %v2237_v26 = vadd.f32 %v2235_v16, %v2227_v27 }
0x2d25   :  { %v2248_v29 = vrot.slane %v2237_v26, 4  ;;  %2245 = vrot.lane.b32.xlu1 %v2237_v26, %s2944_s20 }
0x2d27   :  { %2249 = vrot.lane.b32.xlu0 %v2248_v29, %s2943_s5 }
0x2d97   :  { %v2246_v35 = vpop.permute.xlu1 %2245 }
0x2d98   :  { %v2253_v49 = vsel %vm1259_vm8, %v2252_v33, %v2246_v35 }
0x2d99   :  { %v2250_v51 = vpop.permute.xlu0 %2249 }
0x2d9a   :  { %v2255_v45 = vsel %vm2254_vm9, %v2253_v49, %v2250_v51 }
0x2d9b   :  { %v2257_v37 = vrot.slane %v2255_v45, 2 }
0x2d9d   :  { %2362 = vmatprep.mubr.f32.mxu0 %v2257_v37 }
0x2d9e   :  { %2363 = vmatmul.mubr.f32.vlgmr.msra.gmra.mrb[20].mxu0 %v2255_v45 }
0x2e71   :  { %v2554_v41 = vpop.f32.mrb[20].mxu0 }
0x2e72   :  { %v2555_v43 = vpop.f32.mrb[21].mxu0 }
0x2e73   :  { %v2556_v44 = vadd.f32 %v2555_v43, %v2554_v41 }
0x2e75   :  { %v2365_v47 = vadd.f32 %v2556_v44, %v2511_v42 }
0x2e77   :  { %v2368_v36 = vmax.f32 %v2365_v47, 0.0 }
0x2e79   :  { %2585 = vmatmul.mubr.msk.f32.vlgmr.msra.gmra.mrb[32].mxu1 %vm60_vm0, %v2368_v36 }
0x2f4c   :  { %v2449_v5 = vpop.f32.mrb[32].mxu1 }
0x2f4d   :  { %v2450_v6 = vadd.f32 %v2512_v48, %v2449_v5  ;;  %v2586_v22 = vpop.f32.mrb[33].mxu1 }
0x2f4f   :  { %2453 = vst [vmem:[#allocation4] sm:$0x3] %v2450_v6 }
0x2f50   :  { %2929 = shalt.err (!%p2926_p4)
}
0x2f51   :  { %s2930_s28 = scalar_lea.hbm %s3682_s13, 32 }
0x2f52   :  { %p2931_p5 = scmp.ne.s32.totalorder %s3682_s13, %s2930_s28  ;;  %p2934_p6 = scmp.lt.u32.totalorder %s2930_s28, %s3682_s13 }
0x2f54   :  { %p2936_p7 = pnand %p2934_p6, %p2931_p5 }
0x2f56   :  { %2939 = shalt.err (!%p2936_p7)
}
0x2f57   :  { %2463 = dma.vmem_to_hbm [thread:$0]  %s2461_s3, 32, %s3682_s13, [#allocation5]  }
0x2f58   :  { %2940 = dma.done.wait [#allocation5], 32  }
0x2f59   :  { %2941 = vsyncadd [#allocation5], 4294967264 }
0x2f5a   :  { %2467 = vsyncpa [#allocation5], 1 }

</bundles_post_ra>
